<compile_context>
chip_gen: v7x
topology: tpu7x:2x2x1
jax: 0.10.0
libtpu: 0.0.40
codegen_flags: <defaults>
</compile_context>

<pallas_src>
import functools

import jax
import jax.numpy as jnp
from jax import lax
from jax.experimental import pallas as pl
from jax.experimental.pallas import tpu as pltpu


def _round_up(x, m):
    return ((x + m - 1) // m) * m


def _pow(x, n):
    """x ** n.  Integer n >= 0 -> explicit VPU multiply chain (no EUP exp/log)."""
    if isinstance(n, int) and n >= 0:
        result = None
        base = x
        m = n
        while m > 0:
            if m & 1:
                result = base if result is None else result * base
            m >>= 1
            if m:
                base = base * base
        return jnp.ones_like(x) if result is None else result
    return x ** n  # general (float) exponent; operand is strictly positive here


def _precise_recip(x):
    """Approx (EUP) reciprocal + one Newton step -> ~f32 accuracy, tiny cost."""
    r = pl.reciprocal(x, approx=True)
    return r * (2.0 - x * r)


def _tpu_generation():
    """Best-effort TPU generation from the device kind string (defaults to 6)."""
    try:
        kind = jax.devices()[0].device_kind.lower()
    except Exception:
        return 6
    if "v7" in kind or "7x" in kind:
        return 7
    if "v6" in kind:
        return 6
    if "v5" in kind:
        return 5
    if "v4" in kind:
        return 4
    if "v3" in kind or "v2" in kind:
        return 3
    return 6


def _choose_tile_l(L, S, H, E, D, itemsize, tl_cap, vmem_limit):
    """Largest L tile (multiple of 8, or full L) fitting the VMEM model."""
    budget = int(vmem_limit * 0.85)             # leave scheduler headroom
    v_lane_pad = _round_up(D + 1, 128)          # (S, D+1) slabs pad lanes to 128
    resident = (H * E * S + H * S * v_lane_pad) * itemsize   # K + V_aug, 1-buffered

    def fits(tl):
        q_out = 2 * tl * (H * E + H * D) * itemsize          # Q + out, 2-buffered
        temps = 3 * tl * S * 4                               # live (tL,S) f32 temps
        return resident + q_out + temps <= budget

    tl = max(8, min(_round_up(L, 8), _round_up(tl_cap, 8)))
    while tl > 8 and not fits(tl):
        tl = _round_up(max(8, tl // 2), 8)
    return L if tl >= L else tl


def _dsa_kernel(q_ref, k_ref, v_ref, o_ref, *, num_heads, head_e, head_d,
                factor, use_second_exp, chain_dtype):
    # q_ref: (1, tL, H*E)   lane-dense
    # k_ref: (1, H, E, S)   head-major: k_ref[0, h] is a lane-dense (E, S) slab
    # v_ref: (1, H, S, D+1) head-major, last column is ones (rowsum via the MXU)
    # o_ref: (1, tL, H*D)   lane-dense
    q = q_ref[0]                                      # (tL, H*E)

    for h in range(num_heads):                        # static unroll over heads
        qh = q[:, h * head_e:(h + 1) * head_e]        # (tL, E)
        kh = k_ref[0, h]                              # (E, S): slab select, no relayout
        vh = v_ref[0, h]                              # (S, D+1)

        # scores = qh @ kh, canonical (M,K)x(K,N); f32 accumulation on the MXU.
        scores = lax.dot_general(
            qh, kh, dimension_numbers=(((1,), (0,)), ((), ())),
            preferred_element_type=jnp.float32)       # (tL, S)

        m = jnp.max(scores, axis=-1, keepdims=True)   # (tL, 1)
        d = scores - m                                # (tL, S), <= 0
        e = jnp.exp(d)                                # (tL, S), in (0, 1]
        denom = jnp.sum(e, axis=-1, keepdims=True)    # (tL, 1), >= 1

        # Algebraic collapse of softmax/routing/combined/renormalize:
        #   sparse ∝ e**factor * denom**(1-factor) + e, normalized once at the end.
        # NOTE: for very large factor and very long S, denom**(1-factor) can
        #       underflow f32 (routing term silently dropped).
        w = _pow(_precise_recip(denom), factor - 1)   # (tL, 1)

        if use_second_exp:
            ef = jnp.exp(d * float(factor))           # EUP slot (v6e/v7x): e**factor
        else:
            ef = _pow(e, factor)                      # VPU multiply chain (v5e)

        if chain_dtype == jnp.float32:
            c = ef * w + e                            # (tL, S) unnormalized weights
        else:                                         # bf16 chain on v6e/v7x bf16 inputs
            c = (ef.astype(chain_dtype) * w.astype(chain_dtype)
                 + e.astype(chain_dtype))

        # PV matmul; the ones column of vh yields rowsum(c) in column D so the
        # row normalization needs no extra (tL,S) reduction.
        num_aug = lax.dot_general(
            c.astype(v_ref.dtype), vh,
            dimension_numbers=(((1,), (0,)), ((), ())),
            preferred_element_type=jnp.float32)       # (tL, D+1)
        num = num_aug[:, :head_d]                     # (tL, D)
        rs = num_aug[:, head_d:head_d + 1]            # (tL, 1) = rowsum(c)

        # Store straight into this head's lane slice of the output block (bounds
        # live ranges of the (tL,S) temporaries across the unrolled head loop).
        o_ref[0, :, h * head_d:(h + 1) * head_d] = (
            num * _precise_recip(rs)).astype(o_ref.dtype)


def dynamic_sparse_attention(queries, keys, values, *, factor=5, block_l=None,
                             matmul_dtype=None):
    """queries: (B,L,H,E), keys: (B,S,H,E), values: (B,S,H,D) -> (B,L,H,D)."""
    B, L, H, E = queries.shape
    _, S, _, D = values.shape
    out_dtype = queries.dtype
    gen = _tpu_generation()

    # Generation-dependent budgets: v7x (64 MiB physical VMEM) -> 48 MiB scoped
    # limit and <=256-row L tiles; v5e/v6e (128 MiB) -> 96 MiB and 512-row tiles.
    if gen >= 7:
        vmem_limit, tl_cap = 48 * 1024 * 1024, 256
    elif gen >= 5:
        vmem_limit, tl_cap = 96 * 1024 * 1024, 512
    else:
        vmem_limit, tl_cap = 64 * 1024 * 1024, 512
    if block_l is not None:
        tl_cap = block_l

    use_second_exp = gen >= 6                 # EUP slack + bf16 EUP on v6e/v7x
    in_dtype = jnp.dtype(matmul_dtype) if matmul_dtype is not None else jnp.dtype(out_dtype)
    chain_dtype = jnp.bfloat16 if (gen >= 6 and in_dtype == jnp.bfloat16) else jnp.float32

    # Layout plumbing (one-time HBM passes; the kernel itself is VPU-bound):
    #  * Q stays lane-dense (B, L, H*E): dense DMA per L tile.
    #  * K head-major (B, H, E, S): per-head lane-dense (E, S) matmul tile.
    #  * V head-major + ones column (B, H, S, D+1): PV matmul also produces
    #    rowsum(c) in its last column.
    q = queries.reshape(B, L, H * E).astype(in_dtype)
    k = jnp.transpose(keys, (0, 2, 3, 1)).astype(in_dtype)          # (B, H, E, S)
    v_t = jnp.transpose(values, (0, 2, 1, 3)).astype(in_dtype)      # (B, H, S, D)
    ones = jnp.ones((B, H, S, 1), dtype=in_dtype)
    v = jnp.concatenate([v_t, ones], axis=-1)                       # (B, H, S, D+1)

    itemsize = in_dtype.itemsize
    tl = _choose_tile_l(L, S, H, E, D, itemsize, tl_cap, vmem_limit)

    # v7x megacore: ensure the shardable grid has >= 2 steps when B == 1.
    if gen >= 7 and B == 1 and tl >= L and L >= 16:
        tl = _round_up((L + 1) // 2, 8)

    grid = (B, pl.cdiv(L, tl))

    kernel = functools.partial(
        _dsa_kernel, num_heads=H, head_e=E, head_d=D, factor=factor,
        use_second_exp=use_second_exp, chain_dtype=chain_dtype)

    cost = pl.CostEstimate(
        flops=2 * B * H * L * S * (E + D + 1),
        transcendentals=B * H * L * S * (2 if use_second_exp else 1),
        bytes_accessed=(q.size + k.size + v.size) * itemsize
        + B * L * H * D * jnp.dtype(out_dtype).itemsize)

    def build(single_buffer_kv):
        kv_mode = dict(pipeline_mode=pl.Buffered(1)) if single_buffer_kv else {}
        return pl.pallas_call(
            kernel,
            out_shape=jax.ShapeDtypeStruct((B, L, H * D), out_dtype),
            grid_spec=pltpu.PrefetchScalarGridSpec(
                num_scalar_prefetch=0,
                grid=grid,
                in_specs=[
                    pl.BlockSpec((1, tl, H * E), lambda b, l: (b, l, 0)),
                    # K/V block index changes only at batch boundaries -> reused
                    # across L tiles; single-buffered to halve resident VMEM.
                    pl.BlockSpec((1, H, E, S), lambda b, l: (b, 0, 0, 0), **kv_mode),
                    pl.BlockSpec((1, H, S, D + 1), lambda b, l: (b, 0, 0, 0), **kv_mode),
                ],
                out_specs=pl.BlockSpec((1, tl, H * D), lambda b, l: (b, l, 0)),
            ),
            compiler_params=pltpu.CompilerParams(
                dimension_semantics=("parallel", "parallel"),
                vmem_limit_bytes=vmem_limit,
            ),
            cost_estimate=cost,
        )

    try:
        out = build(True)(q, k, v)
    except Exception:
        # Fallback if this JAX build rejects pipeline_mode / pl.Buffered(1).
        out = build(False)(q, k, v)

    # Free reshape back to the PyTorch output layout.
    return out.reshape(B, L, H, D)


def _reference(queries, keys, values, factor=5):
    scores = jnp.einsum('blhe,bshe->bhls', queries, keys)
    sm = jax.nn.softmax(scores, axis=-1)
    routing = sm ** factor
    combined = (routing + sm) / 2.0
    sparse = combined / jnp.sum(combined, axis=-1, keepdims=True)
    return jnp.einsum('bhls,bshd->blhd', sparse, values)


if __name__ == "__main__":
    key = jax.random.PRNGKey(0)
    B, L, S, H, E, D = 2, 8, 8, 4, 32, 32
    kq, kk, kv = jax.random.split(key, 3)
    queries = jax.random.normal(kq, (B, L, H, E), dtype=jnp.float32)
    keys_ = jax.random.normal(kk, (B, S, H, E), dtype=jnp.float32)
    values = jax.random.normal(kv, (B, S, H, D), dtype=jnp.float32)

    out = dynamic_sparse_attention(queries, keys_, values, factor=5)
    out = jax.block_until_ready(out)

    ref = _reference(queries, keys_, values, factor=5)
    assert out.shape == (B, L, H, D)
    assert jnp.allclose(out, ref, atol=1e-4, rtol=1e-4), "mismatch vs reference"

    print("KERNEL_OK")
</pallas_src>

<mosaic_0001>
module attributes {stable_mosaic.version = 11 : i64} {
  func.func @_dsa_kernel(%arg0: i32, %arg1: i32, %arg2: memref<1x8x128xf32, #tpu.memory_space<vmem>>, %arg3: memref<1x4x32x8xf32, #tpu.memory_space<vmem>>, %arg4: memref<1x4x8x33xf32, #tpu.memory_space<vmem>>, %arg5: memref<1x8x128xf32, #tpu.memory_space<vmem>>) attributes {dimension_semantics = [#tpu.dimension_semantics<parallel>, #tpu.dimension_semantics<parallel>], iteration_bounds = array<i64: 2, 1>, scalar_prefetch = 0 : i64, scratch_operands = 0 : i64, tpu.core_type = #tpu.core_type<tc>, window_params = [{transform_indices = @transform_0, window_bounds = array<i64: 1, 8, 128>}, {pipeline_mode = #tpu.pipeline_mode<synchronous>, transform_indices = @transform_1, window_bounds = array<i64: 1, 4, 32, 8>}, {pipeline_mode = #tpu.pipeline_mode<synchronous>, transform_indices = @transform_2, window_bounds = array<i64: 1, 4, 8, 33>}, {transform_indices = @transform_3, window_bounds = array<i64: 1, 8, 128>}]} {
    %c0 = arith.constant 0 : index
    %c0_0 = arith.constant 0 : index
    %c0_1 = arith.constant 0 : index
    %0 = vector.load %arg2[%c0, %c0_0, %c0_1] : memref<1x8x128xf32, #tpu.memory_space<vmem>>, vector<1x8x128xf32>
    %1 = vector.shape_cast %0 : vector<1x8x128xf32> to vector<8x128xf32>
    %2 = vector.extract_strided_slice %1 {offsets = [0, 0], sizes = [8, 32], strides = [1, 1]} : vector<8x128xf32> to vector<8x32xf32>
    %c0_2 = arith.constant 0 : index
    %c0_3 = arith.constant 0 : index
    %c0_4 = arith.constant 0 : index
    %c0_5 = arith.constant 0 : index
    %3 = vector.load %arg3[%c0_2, %c0_3, %c0_4, %c0_5] : memref<1x4x32x8xf32, #tpu.memory_space<vmem>>, vector<1x1x32x8xf32>
    %4 = vector.shape_cast %3 : vector<1x1x32x8xf32> to vector<32x8xf32>
    %c0_6 = arith.constant 0 : index
    %c0_7 = arith.constant 0 : index
    %c0_8 = arith.constant 0 : index
    %c0_9 = arith.constant 0 : index
    %5 = vector.load %arg4[%c0_6, %c0_7, %c0_8, %c0_9] : memref<1x4x8x33xf32, #tpu.memory_space<vmem>>, vector<1x1x8x33xf32>
    %6 = vector.shape_cast %5 : vector<1x1x8x33xf32> to vector<8x33xf32>
    %cst = arith.constant dense<0.000000e+00> : vector<8x8xf32>
    %7 = tpu.matmul %2, %4, %cst {dimension_numbers = #tpu.dot_dimension_numbers<[1], [0], [0], [1], [0, 0, 1, 1], [], []>} : vector<8x32xf32>, vector<32x8xf32>, vector<8x8xf32> -> vector<8x8xf32>
    %cst_10 = arith.constant dense<0xFF800000> : vector<8xf32>
    %8 = vector.multi_reduction <maximumf>, %7, %cst_10 [1] : vector<8x8xf32> to vector<8xf32>
    %9 = vector.shape_cast %8 : vector<8xf32> to vector<8x1xf32>
    %10 = vector.broadcast %9 : vector<8x1xf32> to vector<8x8xf32>
    %11 = arith.subf %7, %10 : vector<8x8xf32>
    %12 = math.exp %11 : vector<8x8xf32>
    %cst_11 = arith.constant dense<0.000000e+00> : vector<8xf32>
    %13 = vector.multi_reduction <add>, %12, %cst_11 [1] : vector<8x8xf32> to vector<8xf32>
    %14 = vector.shape_cast %13 : vector<8xf32> to vector<8x1xf32>
    %15 = tpu.reciprocal %14 {approx = true} : vector<8x1xf32> -> vector<8x1xf32>
    %16 = arith.mulf %14, %15 : vector<8x1xf32>
    %cst_12 = arith.constant 2.000000e+00 : f32
    %17 = vector.broadcast %cst_12 : f32 to vector<8x1xf32>
    %18 = arith.subf %17, %16 : vector<8x1xf32>
    %19 = arith.mulf %15, %18 : vector<8x1xf32>
    %20 = arith.mulf %19, %19 : vector<8x1xf32>
    %21 = arith.mulf %20, %20 : vector<8x1xf32>
    %cst_13 = arith.constant 5.000000e+00 : f32
    %22 = vector.broadcast %cst_13 : f32 to vector<8x8xf32>
    %23 = arith.mulf %11, %22 : vector<8x8xf32>
    %24 = math.exp %23 : vector<8x8xf32>
    %25 = vector.broadcast %21 : vector<8x1xf32> to vector<8x8xf32>
    %26 = arith.mulf %24, %25 : vector<8x8xf32>
    %27 = arith.addf %26, %12 : vector<8x8xf32>
    %cst_14 = arith.constant dense<0.000000e+00> : vector<8x33xf32>
    %28 = tpu.matmul %27, %6, %cst_14 {dimension_numbers = #tpu.dot_dimension_numbers<[1], [0], [0], [1], [0, 0, 1, 1], [], []>} : vector<8x8xf32>, vector<8x33xf32>, vector<8x33xf32> -> vector<8x33xf32>
    %29 = vector.extract_strided_slice %28 {offsets = [0, 0], sizes = [8, 32], strides = [1, 1]} : vector<8x33xf32> to vector<8x32xf32>
    %30 = vector.extract_strided_slice %28 {offsets = [0, 32], sizes = [8, 1], strides = [1, 1]} : vector<8x33xf32> to vector<8x1xf32>
    %31 = tpu.reciprocal %30 {approx = true} : vector<8x1xf32> -> vector<8x1xf32>
    %32 = arith.mulf %30, %31 : vector<8x1xf32>
    %cst_15 = arith.constant 2.000000e+00 : f32
    %33 = vector.broadcast %cst_15 : f32 to vector<8x1xf32>
    %34 = arith.subf %33, %32 : vector<8x1xf32>
    %35 = arith.mulf %31, %34 : vector<8x1xf32>
    %36 = vector.broadcast %35 : vector<8x1xf32> to vector<8x32xf32>
    %37 = arith.mulf %29, %36 : vector<8x32xf32>
    %c0_16 = arith.constant 0 : index
    %c0_17 = arith.constant 0 : index
    %c0_18 = arith.constant 0 : index
    %38 = vector.load %arg5[%c0_16, %c0_17, %c0_18] : memref<1x8x128xf32, #tpu.memory_space<vmem>>, vector<1x8x32xf32>
    %39 = vector.shape_cast %38 : vector<1x8x32xf32> to vector<8x32xf32>
    %40 = vector.shape_cast %37 : vector<8x32xf32> to vector<1x8x32xf32>
    tpu.vector_store %arg5[%c0_16, %c0_17, %c0_18], %40 {strides = array<i32>} : memref<1x8x128xf32, #tpu.memory_space<vmem>>, vector<1x8x32xf32>,
    %41 = vector.extract_strided_slice %1 {offsets = [0, 32], sizes = [8, 32], strides = [1, 1]} : vector<8x128xf32> to vector<8x32xf32>
    %c0_19 = arith.constant 0 : index
    %c1 = arith.constant 1 : index
    %c0_20 = arith.constant 0 : index
    %c0_21 = arith.constant 0 : index
    %42 = vector.load %arg3[%c0_19, %c1, %c0_20, %c0_21] : memref<1x4x32x8xf32, #tpu.memory_space<vmem>>, vector<1x1x32x8xf32>
    %43 = vector.shape_cast %42 : vector<1x1x32x8xf32> to vector<32x8xf32>
    %c0_22 = arith.constant 0 : index
    %c1_23 = arith.constant 1 : index
    %c0_24 = arith.constant 0 : index
    %c0_25 = arith.constant 0 : index
    %44 = vector.load %arg4[%c0_22, %c1_23, %c0_24, %c0_25] : memref<1x4x8x33xf32, #tpu.memory_space<vmem>>, vector<1x1x8x33xf32>
    %45 = vector.shape_cast %44 : vector<1x1x8x33xf32> to vector<8x33xf32>
    %cst_26 = arith.constant dense<0.000000e+00> : vector<8x8xf32>
    %46 = tpu.matmul %41, %43, %cst_26 {dimension_numbers = #tpu.dot_dimension_numbers<[1], [0], [0], [1], [0, 0, 1, 1], [], []>} : vector<8x32xf32>, vector<32x8xf32>, vector<8x8xf32> -> vector<8x8xf32>
    %cst_27 = arith.constant dense<0xFF800000> : vector<8xf32>
    %47 = vector.multi_reduction <maximumf>, %46, %cst_27 [1] : vector<8x8xf32> to vector<8xf32>
    %48 = vector.shape_cast %47 : vector<8xf32> to vector<8x1xf32>
    %49 = vector.broadcast %48 : vector<8x1xf32> to vector<8x8xf32>
    %50 = arith.subf %46, %49 : vector<8x8xf32>
    %51 = math.exp %50 : vector<8x8xf32>
    %cst_28 = arith.constant dense<0.000000e+00> : vector<8xf32>
    %52 = vector.multi_reduction <add>, %51, %cst_28 [1] : vector<8x8xf32> to vector<8xf32>
    %53 = vector.shape_cast %52 : vector<8xf32> to vector<8x1xf32>
    %54 = tpu.reciprocal %53 {approx = true} : vector<8x1xf32> -> vector<8x1xf32>
    %55 = arith.mulf %53, %54 : vector<8x1xf32>
    %cst_29 = arith.constant 2.000000e+00 : f32
    %56 = vector.broadcast %cst_29 : f32 to vector<8x1xf32>
    %57 = arith.subf %56, %55 : vector<8x1xf32>
    %58 = arith.mulf %54, %57 : vector<8x1xf32>
    %59 = arith.mulf %58, %58 : vector<8x1xf32>
    %60 = arith.mulf %59, %59 : vector<8x1xf32>
    %cst_30 = arith.constant 5.000000e+00 : f32
    %61 = vector.broadcast %cst_30 : f32 to vector<8x8xf32>
    %62 = arith.mulf %50, %61 : vector<8x8xf32>
    %63 = math.exp %62 : vector<8x8xf32>
    %64 = vector.broadcast %60 : vector<8x1xf32> to vector<8x8xf32>
    %65 = arith.mulf %63, %64 : vector<8x8xf32>
    %66 = arith.addf %65, %51 : vector<8x8xf32>
    %cst_31 = arith.constant dense<0.000000e+00> : vector<8x33xf32>
    %67 = tpu.matmul %66, %45, %cst_31 {dimension_numbers = #tpu.dot_dimension_numbers<[1], [0], [0], [1], [0, 0, 1, 1], [], []>} : vector<8x8xf32>, vector<8x33xf32>, vector<8x33xf32> -> vector<8x33xf32>
    %68 = vector.extract_strided_slice %67 {offsets = [0, 0], sizes = [8, 32], strides = [1, 1]} : vector<8x33xf32> to vector<8x32xf32>
    %69 = vector.extract_strided_slice %67 {offsets = [0, 32], sizes = [8, 1], strides = [1, 1]} : vector<8x33xf32> to vector<8x1xf32>
    %70 = tpu.reciprocal %69 {approx = true} : vector<8x1xf32> -> vector<8x1xf32>
    %71 = arith.mulf %69, %70 : vector<8x1xf32>
    %cst_32 = arith.constant 2.000000e+00 : f32
    %72 = vector.broadcast %cst_32 : f32 to vector<8x1xf32>
    %73 = arith.subf %72, %71 : vector<8x1xf32>
    %74 = arith.mulf %70, %73 : vector<8x1xf32>
    %75 = vector.broadcast %74 : vector<8x1xf32> to vector<8x32xf32>
    %76 = arith.mulf %68, %75 : vector<8x32xf32>
    %c0_33 = arith.constant 0 : index
    %c0_34 = arith.constant 0 : index
    %c32 = arith.constant 32 : index
    %77 = vector.load %arg5[%c0_33, %c0_34, %c32] : memref<1x8x128xf32, #tpu.memory_space<vmem>>, vector<1x8x32xf32>
    %78 = vector.shape_cast %77 : vector<1x8x32xf32> to vector<8x32xf32>
    %79 = vector.shape_cast %76 : vector<8x32xf32> to vector<1x8x32xf32>
    tpu.vector_store %arg5[%c0_33, %c0_34, %c32], %79 {strides = array<i32>} : memref<1x8x128xf32, #tpu.memory_space<vmem>>, vector<1x8x32xf32>,
    %80 = vector.extract_strided_slice %1 {offsets = [0, 64], sizes = [8, 32], strides = [1, 1]} : vector<8x128xf32> to vector<8x32xf32>
    %c0_35 = arith.constant 0 : index
    %c2 = arith.constant 2 : index
    %c0_36 = arith.constant 0 : index
    %c0_37 = arith.constant 0 : index
    %81 = vector.load %arg3[%c0_35, %c2, %c0_36, %c0_37] : memref<1x4x32x8xf32, #tpu.memory_space<vmem>>, vector<1x1x32x8xf32>
    %82 = vector.shape_cast %81 : vector<1x1x32x8xf32> to vector<32x8xf32>
    %c0_38 = arith.constant 0 : index
    %c2_39 = arith.constant 2 : index
    %c0_40 = arith.constant 0 : index
    %c0_41 = arith.constant 0 : index
    %83 = vector.load %arg4[%c0_38, %c2_39, %c0_40, %c0_41] : memref<1x4x8x33xf32, #tpu.memory_space<vmem>>, vector<1x1x8x33xf32>
    %84 = vector.shape_cast %83 : vector<1x1x8x33xf32> to vector<8x33xf32>
    %cst_42 = arith.constant dense<0.000000e+00> : vector<8x8xf32>
    %85 = tpu.matmul %80, %82, %cst_42 {dimension_numbers = #tpu.dot_dimension_numbers<[1], [0], [0], [1], [0, 0, 1, 1], [], []>} : vector<8x32xf32>, vector<32x8xf32>, vector<8x8xf32> -> vector<8x8xf32>
    %cst_43 = arith.constant dense<0xFF800000> : vector<8xf32>
    %86 = vector.multi_reduction <maximumf>, %85, %cst_43 [1] : vector<8x8xf32> to vector<8xf32>
    %87 = vector.shape_cast %86 : vector<8xf32> to vector<8x1xf32>
    %88 = vector.broadcast %87 : vector<8x1xf32> to vector<8x8xf32>
    %89 = arith.subf %85, %88 : vector<8x8xf32>
    %90 = math.exp %89 : vector<8x8xf32>
    %cst_44 = arith.constant dense<0.000000e+00> : vector<8xf32>
    %91 = vector.multi_reduction <add>, %90, %cst_44 [1] : vector<8x8xf32> to vector<8xf32>
    %92 = vector.shape_cast %91 : vector<8xf32> to vector<8x1xf32>
    %93 = tpu.reciprocal %92 {approx = true} : vector<8x1xf32> -> vector<8x1xf32>
    %94 = arith.mulf %92, %93 : vector<8x1xf32>
    %cst_45 = arith.constant 2.000000e+00 : f32
    %95 = vector.broadcast %cst_45 : f32 to vector<8x1xf32>
    %96 = arith.subf %95, %94 : vector<8x1xf32>
    %97 = arith.mulf %93, %96 : vector<8x1xf32>
    %98 = arith.mulf %97, %97 : vector<8x1xf32>
    %99 = arith.mulf %98, %98 : vector<8x1xf32>
    %cst_46 = arith.constant 5.000000e+00 : f32
    %100 = vector.broadcast %cst_46 : f32 to vector<8x8xf32>
    %101 = arith.mulf %89, %100 : vector<8x8xf32>
    %102 = math.exp %101 : vector<8x8xf32>
    %103 = vector.broadcast %99 : vector<8x1xf32> to vector<8x8xf32>
    %104 = arith.mulf %102, %103 : vector<8x8xf32>
    %105 = arith.addf %104, %90 : vector<8x8xf32>
    %cst_47 = arith.constant dense<0.000000e+00> : vector<8x33xf32>
    %106 = tpu.matmul %105, %84, %cst_47 {dimension_numbers = #tpu.dot_dimension_numbers<[1], [0], [0], [1], [0, 0, 1, 1], [], []>} : vector<8x8xf32>, vector<8x33xf32>, vector<8x33xf32> -> vector<8x33xf32>
    %107 = vector.extract_strided_slice %106 {offsets = [0, 0], sizes = [8, 32], strides = [1, 1]} : vector<8x33xf32> to vector<8x32xf32>
    %108 = vector.extract_strided_slice %106 {offsets = [0, 32], sizes = [8, 1], strides = [1, 1]} : vector<8x33xf32> to vector<8x1xf32>
    %109 = tpu.reciprocal %108 {approx = true} : vector<8x1xf32> -> vector<8x1xf32>
    %110 = arith.mulf %108, %109 : vector<8x1xf32>
    %cst_48 = arith.constant 2.000000e+00 : f32
    %111 = vector.broadcast %cst_48 : f32 to vector<8x1xf32>
    %112 = arith.subf %111, %110 : vector<8x1xf32>
    %113 = arith.mulf %109, %112 : vector<8x1xf32>
    %114 = vector.broadcast %113 : vector<8x1xf32> to vector<8x32xf32>
    %115 = arith.mulf %107, %114 : vector<8x32xf32>
    %c0_49 = arith.constant 0 : index
    %c0_50 = arith.constant 0 : index
    %c64 = arith.constant 64 : index
    %116 = vector.load %arg5[%c0_49, %c0_50, %c64] : memref<1x8x128xf32, #tpu.memory_space<vmem>>, vector<1x8x32xf32>
    %117 = vector.shape_cast %116 : vector<1x8x32xf32> to vector<8x32xf32>
    %118 = vector.shape_cast %115 : vector<8x32xf32> to vector<1x8x32xf32>
    tpu.vector_store %arg5[%c0_49, %c0_50, %c64], %118 {strides = array<i32>} : memref<1x8x128xf32, #tpu.memory_space<vmem>>, vector<1x8x32xf32>,
    %119 = vector.extract_strided_slice %1 {offsets = [0, 96], sizes = [8, 32], strides = [1, 1]} : vector<8x128xf32> to vector<8x32xf32>
    %c0_51 = arith.constant 0 : index
    %c3 = arith.constant 3 : index
    %c0_52 = arith.constant 0 : index
    %c0_53 = arith.constant 0 : index
    %120 = vector.load %arg3[%c0_51, %c3, %c0_52, %c0_53] : memref<1x4x32x8xf32, #tpu.memory_space<vmem>>, vector<1x1x32x8xf32>
    %121 = vector.shape_cast %120 : vector<1x1x32x8xf32> to vector<32x8xf32>
    %c0_54 = arith.constant 0 : index
    %c3_55 = arith.constant 3 : index
    %c0_56 = arith.constant 0 : index
    %c0_57 = arith.constant 0 : index
    %122 = vector.load %arg4[%c0_54, %c3_55, %c0_56, %c0_57] : memref<1x4x8x33xf32, #tpu.memory_space<vmem>>, vector<1x1x8x33xf32>
    %123 = vector.shape_cast %122 : vector<1x1x8x33xf32> to vector<8x33xf32>
    %cst_58 = arith.constant dense<0.000000e+00> : vector<8x8xf32>
    %124 = tpu.matmul %119, %121, %cst_58 {dimension_numbers = #tpu.dot_dimension_numbers<[1], [0], [0], [1], [0, 0, 1, 1], [], []>} : vector<8x32xf32>, vector<32x8xf32>, vector<8x8xf32> -> vector<8x8xf32>
    %cst_59 = arith.constant dense<0xFF800000> : vector<8xf32>
    %125 = vector.multi_reduction <maximumf>, %124, %cst_59 [1] : vector<8x8xf32> to vector<8xf32>
    %126 = vector.shape_cast %125 : vector<8xf32> to vector<8x1xf32>
    %127 = vector.broadcast %126 : vector<8x1xf32> to vector<8x8xf32>
    %128 = arith.subf %124, %127 : vector<8x8xf32>
    %129 = math.exp %128 : vector<8x8xf32>
    %cst_60 = arith.constant dense<0.000000e+00> : vector<8xf32>
    %130 = vector.multi_reduction <add>, %129, %cst_60 [1] : vector<8x8xf32> to vector<8xf32>
    %131 = vector.shape_cast %130 : vector<8xf32> to vector<8x1xf32>
    %132 = tpu.reciprocal %131 {approx = true} : vector<8x1xf32> -> vector<8x1xf32>
    %133 = arith.mulf %131, %132 : vector<8x1xf32>
    %cst_61 = arith.constant 2.000000e+00 : f32
    %134 = vector.broadcast %cst_61 : f32 to vector<8x1xf32>
    %135 = arith.subf %134, %133 : vector<8x1xf32>
    %136 = arith.mulf %132, %135 : vector<8x1xf32>
    %137 = arith.mulf %136, %136 : vector<8x1xf32>
    %138 = arith.mulf %137, %137 : vector<8x1xf32>
    %cst_62 = arith.constant 5.000000e+00 : f32
    %139 = vector.broadcast %cst_62 : f32 to vector<8x8xf32>
    %140 = arith.mulf %128, %139 : vector<8x8xf32>
    %141 = math.exp %140 : vector<8x8xf32>
    %142 = vector.broadcast %138 : vector<8x1xf32> to vector<8x8xf32>
    %143 = arith.mulf %141, %142 : vector<8x8xf32>
    %144 = arith.addf %143, %129 : vector<8x8xf32>
    %cst_63 = arith.constant dense<0.000000e+00> : vector<8x33xf32>
    %145 = tpu.matmul %144, %123, %cst_63 {dimension_numbers = #tpu.dot_dimension_numbers<[1], [0], [0], [1], [0, 0, 1, 1], [], []>} : vector<8x8xf32>, vector<8x33xf32>, vector<8x33xf32> -> vector<8x33xf32>
    %146 = vector.extract_strided_slice %145 {offsets = [0, 0], sizes = [8, 32], strides = [1, 1]} : vector<8x33xf32> to vector<8x32xf32>
    %147 = vector.extract_strided_slice %145 {offsets = [0, 32], sizes = [8, 1], strides = [1, 1]} : vector<8x33xf32> to vector<8x1xf32>
    %148 = tpu.reciprocal %147 {approx = true} : vector<8x1xf32> -> vector<8x1xf32>
    %149 = arith.mulf %147, %148 : vector<8x1xf32>
    %cst_64 = arith.constant 2.000000e+00 : f32
    %150 = vector.broadcast %cst_64 : f32 to vector<8x1xf32>
    %151 = arith.subf %150, %149 : vector<8x1xf32>
    %152 = arith.mulf %148, %151 : vector<8x1xf32>
    %153 = vector.broadcast %152 : vector<8x1xf32> to vector<8x32xf32>
    %154 = arith.mulf %146, %153 : vector<8x32xf32>
    %c0_65 = arith.constant 0 : index
    %c0_66 = arith.constant 0 : index
    %c96 = arith.constant 96 : index
    %155 = vector.load %arg5[%c0_65, %c0_66, %c96] : memref<1x8x128xf32, #tpu.memory_space<vmem>>, vector<1x8x32xf32>
    %156 = vector.shape_cast %155 : vector<1x8x32xf32> to vector<8x32xf32>
    %157 = vector.shape_cast %154 : vector<8x32xf32> to vector<1x8x32xf32>
    tpu.vector_store %arg5[%c0_65, %c0_66, %c96], %157 {strides = array<i32>} : memref<1x8x128xf32, #tpu.memory_space<vmem>>, vector<1x8x32xf32>,
    return
  }
  func.func @transform_0(%arg0: i32, %arg1: i32) -> (i32, i32, i32) {
    %c0_i32 = arith.constant 0 : i32
    %c0_i32_0 = arith.constant 0 : i32
    return %arg0, %arg1, %c0_i32 : i32, i32, i32
  }
  func.func @transform_1(%arg0: i32, %arg1: i32) -> (i32, i32, i32, i32) {
    %c0_i32 = arith.constant 0 : i32
    %c0_i32_0 = arith.constant 0 : i32
    %c0_i32_1 = arith.constant 0 : i32
    %c0_i32_2 = arith.constant 0 : i32
    return %arg0, %c0_i32, %c0_i32_0, %c0_i32_1 : i32, i32, i32, i32
  }
  func.func @transform_2(%arg0: i32, %arg1: i32) -> (i32, i32, i32, i32) {
    %c0_i32 = arith.constant 0 : i32
    %c0_i32_0 = arith.constant 0 : i32
    %c0_i32_1 = arith.constant 0 : i32
    %c0_i32_2 = arith.constant 0 : i32
    return %arg0, %c0_i32, %c0_i32_0, %c0_i32_1 : i32, i32, i32, i32
  }
  func.func @transform_3(%arg0: i32, %arg1: i32) -> (i32, i32, i32) {
    %c0_i32 = arith.constant 0 : i32
    %c0_i32_0 = arith.constant 0 : i32
    return %arg0, %arg1, %c0_i32 : i32, i32, i32
  }
}

module attributes {stable_mosaic.version = 11 : i64} {
  func.func @_dsa_kernel(%arg0: i32, %arg1: i32, %arg2: memref<1x8x128xf32, #tpu.memory_space<vmem>>, %arg3: memref<1x4x32x8xf32, #tpu.memory_space<vmem>>, %arg4: memref<1x4x8x33xf32, #tpu.memory_space<vmem>>, %arg5: memref<1x8x128xf32, #tpu.memory_space<vmem>>) attributes {dimension_semantics = [#tpu.dimension_semantics<parallel>, #tpu.dimension_semantics<parallel>], iteration_bounds = array<i64: 2, 1>, scalar_prefetch = 0 : i64, scratch_operands = 0 : i64, tpu.core_type = #tpu.core_type<tc>, window_params = [{transform_indices = @transform_0, window_bounds = array<i64: 1, 8, 128>}, {transform_indices = @transform_1, window_bounds = array<i64: 1, 4, 32, 8>}, {transform_indices = @transform_2, window_bounds = array<i64: 1, 4, 8, 33>}, {transform_indices = @transform_3, window_bounds = array<i64: 1, 8, 128>}]} {
    %c0 = arith.constant 0 : index
    %c0_0 = arith.constant 0 : index
    %c0_1 = arith.constant 0 : index
    %0 = vector.load %arg2[%c0, %c0_0, %c0_1] : memref<1x8x128xf32, #tpu.memory_space<vmem>>, vector<1x8x128xf32>
    %1 = vector.shape_cast %0 : vector<1x8x128xf32> to vector<8x128xf32>
    %2 = vector.extract_strided_slice %1 {offsets = [0, 0], sizes = [8, 32], strides = [1, 1]} : vector<8x128xf32> to vector<8x32xf32>
    %c0_2 = arith.constant 0 : index
    %c0_3 = arith.constant 0 : index
    %c0_4 = arith.constant 0 : index
    %c0_5 = arith.constant 0 : index
    %3 = vector.load %arg3[%c0_2, %c0_3, %c0_4, %c0_5] : memref<1x4x32x8xf32, #tpu.memory_space<vmem>>, vector<1x1x32x8xf32>
    %4 = vector.shape_cast %3 : vector<1x1x32x8xf32> to vector<32x8xf32>
    %c0_6 = arith.constant 0 : index
    %c0_7 = arith.constant 0 : index
    %c0_8 = arith.constant 0 : index
    %c0_9 = arith.constant 0 : index
    %5 = vector.load %arg4[%c0_6, %c0_7, %c0_8, %c0_9] : memref<1x4x8x33xf32, #tpu.memory_space<vmem>>, vector<1x1x8x33xf32>
    %6 = vector.shape_cast %5 : vector<1x1x8x33xf32> to vector<8x33xf32>
    %cst = arith.constant dense<0.000000e+00> : vector<8x8xf32>
    %7 = tpu.matmul %2, %4, %cst {dimension_numbers = #tpu.dot_dimension_numbers<[1], [0], [0], [1], [0, 0, 1, 1], [], []>} : vector<8x32xf32>, vector<32x8xf32>, vector<8x8xf32> -> vector<8x8xf32>
    %cst_10 = arith.constant dense<0xFF800000> : vector<8xf32>
    %8 = vector.multi_reduction <maximumf>, %7, %cst_10 [1] : vector<8x8xf32> to vector<8xf32>
    %9 = vector.shape_cast %8 : vector<8xf32> to vector<8x1xf32>
    %10 = vector.broadcast %9 : vector<8x1xf32> to vector<8x8xf32>
    %11 = arith.subf %7, %10 : vector<8x8xf32>
    %12 = math.exp %11 : vector<8x8xf32>
    %cst_11 = arith.constant dense<0.000000e+00> : vector<8xf32>
    %13 = vector.multi_reduction <add>, %12, %cst_11 [1] : vector<8x8xf32> to vector<8xf32>
    %14 = vector.shape_cast %13 : vector<8xf32> to vector<8x1xf32>
    %15 = tpu.reciprocal %14 {approx = true} : vector<8x1xf32> -> vector<8x1xf32>
    %16 = arith.mulf %14, %15 : vector<8x1xf32>
    %cst_12 = arith.constant 2.000000e+00 : f32
    %17 = vector.broadcast %cst_12 : f32 to vector<8x1xf32>
    %18 = arith.subf %17, %16 : vector<8x1xf32>
    %19 = arith.mulf %15, %18 : vector<8x1xf32>
    %20 = arith.mulf %19, %19 : vector<8x1xf32>
    %21 = arith.mulf %20, %20 : vector<8x1xf32>
    %cst_13 = arith.constant 5.000000e+00 : f32
    %22 = vector.broadcast %cst_13 : f32 to vector<8x8xf32>
    %23 = arith.mulf %11, %22 : vector<8x8xf32>
    %24 = math.exp %23 : vector<8x8xf32>
    %25 = vector.broadcast %21 : vector<8x1xf32> to vector<8x8xf32>
    %26 = arith.mulf %24, %25 : vector<8x8xf32>
    %27 = arith.addf %26, %12 : vector<8x8xf32>
    %cst_14 = arith.constant dense<0.000000e+00> : vector<8x33xf32>
    %28 = tpu.matmul %27, %6, %cst_14 {dimension_numbers = #tpu.dot_dimension_numbers<[1], [0], [0], [1], [0, 0, 1, 1], [], []>} : vector<8x8xf32>, vector<8x33xf32>, vector<8x33xf32> -> vector<8x33xf32>
    %29 = vector.extract_strided_slice %28 {offsets = [0, 0], sizes = [8, 32], strides = [1, 1]} : vector<8x33xf32> to vector<8x32xf32>
    %30 = vector.extract_strided_slice %28 {offsets = [0, 32], sizes = [8, 1], strides = [1, 1]} : vector<8x33xf32> to vector<8x1xf32>
    %31 = tpu.reciprocal %30 {approx = true} : vector<8x1xf32> -> vector<8x1xf32>
    %32 = arith.mulf %30, %31 : vector<8x1xf32>
    %cst_15 = arith.constant 2.000000e+00 : f32
    %33 = vector.broadcast %cst_15 : f32 to vector<8x1xf32>
    %34 = arith.subf %33, %32 : vector<8x1xf32>
    %35 = arith.mulf %31, %34 : vector<8x1xf32>
    %36 = vector.broadcast %35 : vector<8x1xf32> to vector<8x32xf32>
    %37 = arith.mulf %29, %36 : vector<8x32xf32>
    %c0_16 = arith.constant 0 : index
    %c0_17 = arith.constant 0 : index
    %c0_18 = arith.constant 0 : index
    %38 = vector.load %arg5[%c0_16, %c0_17, %c0_18] : memref<1x8x128xf32, #tpu.memory_space<vmem>>, vector<1x8x32xf32>
    %39 = vector.shape_cast %38 : vector<1x8x32xf32> to vector<8x32xf32>
    %40 = vector.shape_cast %37 : vector<8x32xf32> to vector<1x8x32xf32>
    tpu.vector_store %arg5[%c0_16, %c0_17, %c0_18], %40 {strides = array<i32>} : memref<1x8x128xf32, #tpu.memory_space<vmem>>, vector<1x8x32xf32>,
    %41 = vector.extract_strided_slice %1 {offsets = [0, 32], sizes = [8, 32], strides = [1, 1]} : vector<8x128xf32> to vector<8x32xf32>
    %c0_19 = arith.constant 0 : index
    %c1 = arith.constant 1 : index
    %c0_20 = arith.constant 0 : index
    %c0_21 = arith.constant 0 : index
    %42 = vector.load %arg3[%c0_19, %c1, %c0_20, %c0_21] : memref<1x4x32x8xf32, #tpu.memory_space<vmem>>, vector<1x1x32x8xf32>
    %43 = vector.shape_cast %42 : vector<1x1x32x8xf32> to vector<32x8xf32>
    %c0_22 = arith.constant 0 : index
    %c1_23 = arith.constant 1 : index
    %c0_24 = arith.constant 0 : index
    %c0_25 = arith.constant 0 : index
    %44 = vector.load %arg4[%c0_22, %c1_23, %c0_24, %c0_25] : memref<1x4x8x33xf32, #tpu.memory_space<vmem>>, vector<1x1x8x33xf32>
    %45 = vector.shape_cast %44 : vector<1x1x8x33xf32> to vector<8x33xf32>
    %cst_26 = arith.constant dense<0.000000e+00> : vector<8x8xf32>
    %46 = tpu.matmul %41, %43, %cst_26 {dimension_numbers = #tpu.dot_dimension_numbers<[1], [0], [0], [1], [0, 0, 1, 1], [], []>} : vector<8x32xf32>, vector<32x8xf32>, vector<8x8xf32> -> vector<8x8xf32>
    %cst_27 = arith.constant dense<0xFF800000> : vector<8xf32>
    %47 = vector.multi_reduction <maximumf>, %46, %cst_27 [1] : vector<8x8xf32> to vector<8xf32>
    %48 = vector.shape_cast %47 : vector<8xf32> to vector<8x1xf32>
    %49 = vector.broadcast %48 : vector<8x1xf32> to vector<8x8xf32>
    %50 = arith.subf %46, %49 : vector<8x8xf32>
    %51 = math.exp %50 : vector<8x8xf32>
    %cst_28 = arith.constant dense<0.000000e+00> : vector<8xf32>
    %52 = vector.multi_reduction <add>, %51, %cst_28 [1] : vector<8x8xf32> to vector<8xf32>
    %53 = vector.shape_cast %52 : vector<8xf32> to vector<8x1xf32>
    %54 = tpu.reciprocal %53 {approx = true} : vector<8x1xf32> -> vector<8x1xf32>
    %55 = arith.mulf %53, %54 : vector<8x1xf32>
    %cst_29 = arith.constant 2.000000e+00 : f32
    %56 = vector.broadcast %cst_29 : f32 to vector<8x1xf32>
    %57 = arith.subf %56, %55 : vector<8x1xf32>
    %58 = arith.mulf %54, %57 : vector<8x1xf32>
    %59 = arith.mulf %58, %58 : vector<8x1xf32>
    %60 = arith.mulf %59, %59 : vector<8x1xf32>
    %cst_30 = arith.constant 5.000000e+00 : f32
    %61 = vector.broadcast %cst_30 : f32 to vector<8x8xf32>
    %62 = arith.mulf %50, %61 : vector<8x8xf32>
    %63 = math.exp %62 : vector<8x8xf32>
    %64 = vector.broadcast %60 : vector<8x1xf32> to vector<8x8xf32>
    %65 = arith.mulf %63, %64 : vector<8x8xf32>
    %66 = arith.addf %65, %51 : vector<8x8xf32>
    %cst_31 = arith.constant dense<0.000000e+00> : vector<8x33xf32>
    %67 = tpu.matmul %66, %45, %cst_31 {dimension_numbers = #tpu.dot_dimension_numbers<[1], [0], [0], [1], [0, 0, 1, 1], [], []>} : vector<8x8xf32>, vector<8x33xf32>, vector<8x33xf32> -> vector<8x33xf32>
    %68 = vector.extract_strided_slice %67 {offsets = [0, 0], sizes = [8, 32], strides = [1, 1]} : vector<8x33xf32> to vector<8x32xf32>
    %69 = vector.extract_strided_slice %67 {offsets = [0, 32], sizes = [8, 1], strides = [1, 1]} : vector<8x33xf32> to vector<8x1xf32>
    %70 = tpu.reciprocal %69 {approx = true} : vector<8x1xf32> -> vector<8x1xf32>
    %71 = arith.mulf %69, %70 : vector<8x1xf32>
    %cst_32 = arith.constant 2.000000e+00 : f32
    %72 = vector.broadcast %cst_32 : f32 to vector<8x1xf32>
    %73 = arith.subf %72, %71 : vector<8x1xf32>
    %74 = arith.mulf %70, %73 : vector<8x1xf32>
    %75 = vector.broadcast %74 : vector<8x1xf32> to vector<8x32xf32>
    %76 = arith.mulf %68, %75 : vector<8x32xf32>
    %c0_33 = arith.constant 0 : index
    %c0_34 = arith.constant 0 : index
    %c32 = arith.constant 32 : index
    %77 = vector.load %arg5[%c0_33, %c0_34, %c32] : memref<1x8x128xf32, #tpu.memory_space<vmem>>, vector<1x8x32xf32>
    %78 = vector.shape_cast %77 : vector<1x8x32xf32> to vector<8x32xf32>
    %79 = vector.shape_cast %76 : vector<8x32xf32> to vector<1x8x32xf32>
    tpu.vector_store %arg5[%c0_33, %c0_34, %c32], %79 {strides = array<i32>} : memref<1x8x128xf32, #tpu.memory_space<vmem>>, vector<1x8x32xf32>,
    %80 = vector.extract_strided_slice %1 {offsets = [0, 64], sizes = [8, 32], strides = [1, 1]} : vector<8x128xf32> to vector<8x32xf32>
    %c0_35 = arith.constant 0 : index
    %c2 = arith.constant 2 : index
    %c0_36 = arith.constant 0 : index
    %c0_37 = arith.constant 0 : index
    %81 = vector.load %arg3[%c0_35, %c2, %c0_36, %c0_37] : memref<1x4x32x8xf32, #tpu.memory_space<vmem>>, vector<1x1x32x8xf32>
    %82 = vector.shape_cast %81 : vector<1x1x32x8xf32> to vector<32x8xf32>
    %c0_38 = arith.constant 0 : index
    %c2_39 = arith.constant 2 : index
    %c0_40 = arith.constant 0 : index
    %c0_41 = arith.constant 0 : index
    %83 = vector.load %arg4[%c0_38, %c2_39, %c0_40, %c0_41] : memref<1x4x8x33xf32, #tpu.memory_space<vmem>>, vector<1x1x8x33xf32>
    %84 = vector.shape_cast %83 : vector<1x1x8x33xf32> to vector<8x33xf32>
    %cst_42 = arith.constant dense<0.000000e+00> : vector<8x8xf32>
    %85 = tpu.matmul %80, %82, %cst_42 {dimension_numbers = #tpu.dot_dimension_numbers<[1], [0], [0], [1], [0, 0, 1, 1], [], []>} : vector<8x32xf32>, vector<32x8xf32>, vector<8x8xf32> -> vector<8x8xf32>
    %cst_43 = arith.constant dense<0xFF800000> : vector<8xf32>
    %86 = vector.multi_reduction <maximumf>, %85, %cst_43 [1] : vector<8x8xf32> to vector<8xf32>
    %87 = vector.shape_cast %86 : vector<8xf32> to vector<8x1xf32>
    %88 = vector.broadcast %87 : vector<8x1xf32> to vector<8x8xf32>
    %89 = arith.subf %85, %88 : vector<8x8xf32>
    %90 = math.exp %89 : vector<8x8xf32>
    %cst_44 = arith.constant dense<0.000000e+00> : vector<8xf32>
    %91 = vector.multi_reduction <add>, %90, %cst_44 [1] : vector<8x8xf32> to vector<8xf32>
    %92 = vector.shape_cast %91 : vector<8xf32> to vector<8x1xf32>
    %93 = tpu.reciprocal %92 {approx = true} : vector<8x1xf32> -> vector<8x1xf32>
    %94 = arith.mulf %92, %93 : vector<8x1xf32>
    %cst_45 = arith.constant 2.000000e+00 : f32
    %95 = vector.broadcast %cst_45 : f32 to vector<8x1xf32>
    %96 = arith.subf %95, %94 : vector<8x1xf32>
    %97 = arith.mulf %93, %96 : vector<8x1xf32>
    %98 = arith.mulf %97, %97 : vector<8x1xf32>
    %99 = arith.mulf %98, %98 : vector<8x1xf32>
    %cst_46 = arith.constant 5.000000e+00 : f32
    %100 = vector.broadcast %cst_46 : f32 to vector<8x8xf32>
    %101 = arith.mulf %89, %100 : vector<8x8xf32>
    %102 = math.exp %101 : vector<8x8xf32>
    %103 = vector.broadcast %99 : vector<8x1xf32> to vector<8x8xf32>
    %104 = arith.mulf %102, %103 : vector<8x8xf32>
    %105 = arith.addf %104, %90 : vector<8x8xf32>
    %cst_47 = arith.constant dense<0.000000e+00> : vector<8x33xf32>
    %106 = tpu.matmul %105, %84, %cst_47 {dimension_numbers = #tpu.dot_dimension_numbers<[1], [0], [0], [1], [0, 0, 1, 1], [], []>} : vector<8x8xf32>, vector<8x33xf32>, vector<8x33xf32> -> vector<8x33xf32>
    %107 = vector.extract_strided_slice %106 {offsets = [0, 0], sizes = [8, 32], strides = [1, 1]} : vector<8x33xf32> to vector<8x32xf32>
    %108 = vector.extract_strided_slice %106 {offsets = [0, 32], sizes = [8, 1], strides = [1, 1]} : vector<8x33xf32> to vector<8x1xf32>
    %109 = tpu.reciprocal %108 {approx = true} : vector<8x1xf32> -> vector<8x1xf32>
    %110 = arith.mulf %108, %109 : vector<8x1xf32>
    %cst_48 = arith.constant 2.000000e+00 : f32
    %111 = vector.broadcast %cst_48 : f32 to vector<8x1xf32>
    %112 = arith.subf %111, %110 : vector<8x1xf32>
    %113 = arith.mulf %109, %112 : vector<8x1xf32>
    %114 = vector.broadcast %113 : vector<8x1xf32> to vector<8x32xf32>
    %115 = arith.mulf %107, %114 : vector<8x32xf32>
    %c0_49 = arith.constant 0 : index
    %c0_50 = arith.constant 0 : index
    %c64 = arith.constant 64 : index
    %116 = vector.load %arg5[%c0_49, %c0_50, %c64] : memref<1x8x128xf32, #tpu.memory_space<vmem>>, vector<1x8x32xf32>
    %117 = vector.shape_cast %116 : vector<1x8x32xf32> to vector<8x32xf32>
    %118 = vector.shape_cast %115 : vector<8x32xf32> to vector<1x8x32xf32>
    tpu.vector_store %arg5[%c0_49, %c0_50, %c64], %118 {strides = array<i32>} : memref<1x8x128xf32, #tpu.memory_space<vmem>>, vector<1x8x32xf32>,
    %119 = vector.extract_strided_slice %1 {offsets = [0, 96], sizes = [8, 32], strides = [1, 1]} : vector<8x128xf32> to vector<8x32xf32>
    %c0_51 = arith.constant 0 : index
    %c3 = arith.constant 3 : index
    %c0_52 = arith.constant 0 : index
    %c0_53 = arith.constant 0 : index
    %120 = vector.load %arg3[%c0_51, %c3, %c0_52, %c0_53] : memref<1x4x32x8xf32, #tpu.memory_space<vmem>>, vector<1x1x32x8xf32>
    %121 = vector.shape_cast %120 : vector<1x1x32x8xf32> to vector<32x8xf32>
    %c0_54 = arith.constant 0 : index
    %c3_55 = arith.constant 3 : index
    %c0_56 = arith.constant 0 : index
    %c0_57 = arith.constant 0 : index
    %122 = vector.load %arg4[%c0_54, %c3_55, %c0_56, %c0_57] : memref<1x4x8x33xf32, #tpu.memory_space<vmem>>, vector<1x1x8x33xf32>
    %123 = vector.shape_cast %122 : vector<1x1x8x33xf32> to vector<8x33xf32>
    %cst_58 = arith.constant dense<0.000000e+00> : vector<8x8xf32>
    %124 = tpu.matmul %119, %121, %cst_58 {dimension_numbers = #tpu.dot_dimension_numbers<[1], [0], [0], [1], [0, 0, 1, 1], [], []>} : vector<8x32xf32>, vector<32x8xf32>, vector<8x8xf32> -> vector<8x8xf32>
    %cst_59 = arith.constant dense<0xFF800000> : vector<8xf32>
    %125 = vector.multi_reduction <maximumf>, %124, %cst_59 [1] : vector<8x8xf32> to vector<8xf32>
    %126 = vector.shape_cast %125 : vector<8xf32> to vector<8x1xf32>
    %127 = vector.broadcast %126 : vector<8x1xf32> to vector<8x8xf32>
    %128 = arith.subf %124, %127 : vector<8x8xf32>
    %129 = math.exp %128 : vector<8x8xf32>
    %cst_60 = arith.constant dense<0.000000e+00> : vector<8xf32>
    %130 = vector.multi_reduction <add>, %129, %cst_60 [1] : vector<8x8xf32> to vector<8xf32>
    %131 = vector.shape_cast %130 : vector<8xf32> to vector<8x1xf32>
    %132 = tpu.reciprocal %131 {approx = true} : vector<8x1xf32> -> vector<8x1xf32>
    %133 = arith.mulf %131, %132 : vector<8x1xf32>
    %cst_61 = arith.constant 2.000000e+00 : f32
    %134 = vector.broadcast %cst_61 : f32 to vector<8x1xf32>
    %135 = arith.subf %134, %133 : vector<8x1xf32>
    %136 = arith.mulf %132, %135 : vector<8x1xf32>
    %137 = arith.mulf %136, %136 : vector<8x1xf32>
    %138 = arith.mulf %137, %137 : vector<8x1xf32>
    %cst_62 = arith.constant 5.000000e+00 : f32
    %139 = vector.broadcast %cst_62 : f32 to vector<8x8xf32>
    %140 = arith.mulf %128, %139 : vector<8x8xf32>
    %141 = math.exp %140 : vector<8x8xf32>
    %142 = vector.broadcast %138 : vector<8x1xf32> to vector<8x8xf32>
    %143 = arith.mulf %141, %142 : vector<8x8xf32>
    %144 = arith.addf %143, %129 : vector<8x8xf32>
    %cst_63 = arith.constant dense<0.000000e+00> : vector<8x33xf32>
    %145 = tpu.matmul %144, %123, %cst_63 {dimension_numbers = #tpu.dot_dimension_numbers<[1], [0], [0], [1], [0, 0, 1, 1], [], []>} : vector<8x8xf32>, vector<8x33xf32>, vector<8x33xf32> -> vector<8x33xf32>
    %146 = vector.extract_strided_slice %145 {offsets = [0, 0], sizes = [8, 32], strides = [1, 1]} : vector<8x33xf32> to vector<8x32xf32>
    %147 = vector.extract_strided_slice %145 {offsets = [0, 32], sizes = [8, 1], strides = [1, 1]} : vector<8x33xf32> to vector<8x1xf32>
    %148 = tpu.reciprocal %147 {approx = true} : vector<8x1xf32> -> vector<8x1xf32>
    %149 = arith.mulf %147, %148 : vector<8x1xf32>
    %cst_64 = arith.constant 2.000000e+00 : f32
    %150 = vector.broadcast %cst_64 : f32 to vector<8x1xf32>
    %151 = arith.subf %150, %149 : vector<8x1xf32>
    %152 = arith.mulf %148, %151 : vector<8x1xf32>
    %153 = vector.broadcast %152 : vector<8x1xf32> to vector<8x32xf32>
    %154 = arith.mulf %146, %153 : vector<8x32xf32>
    %c0_65 = arith.constant 0 : index
    %c0_66 = arith.constant 0 : index
    %c96 = arith.constant 96 : index
    %155 = vector.load %arg5[%c0_65, %c0_66, %c96] : memref<1x8x128xf32, #tpu.memory_space<vmem>>, vector<1x8x32xf32>
    %156 = vector.shape_cast %155 : vector<1x8x32xf32> to vector<8x32xf32>
    %157 = vector.shape_cast %154 : vector<8x32xf32> to vector<1x8x32xf32>
    tpu.vector_store %arg5[%c0_65, %c0_66, %c96], %157 {strides = array<i32>} : memref<1x8x128xf32, #tpu.memory_space<vmem>>, vector<1x8x32xf32>,
    return
  }
  func.func @transform_0(%arg0: i32, %arg1: i32) -> (i32, i32, i32) {
    %c0_i32 = arith.constant 0 : i32
    %c0_i32_0 = arith.constant 0 : i32
    return %arg0, %arg1, %c0_i32 : i32, i32, i32
  }
  func.func @transform_1(%arg0: i32, %arg1: i32) -> (i32, i32, i32, i32) {
    %c0_i32 = arith.constant 0 : i32
    %c0_i32_0 = arith.constant 0 : i32
    %c0_i32_1 = arith.constant 0 : i32
    %c0_i32_2 = arith.constant 0 : i32
    return %arg0, %c0_i32, %c0_i32_0, %c0_i32_1 : i32, i32, i32, i32
  }
  func.func @transform_2(%arg0: i32, %arg1: i32) -> (i32, i32, i32, i32) {
    %c0_i32 = arith.constant 0 : i32
    %c0_i32_0 = arith.constant 0 : i32
    %c0_i32_1 = arith.constant 0 : i32
    %c0_i32_2 = arith.constant 0 : i32
    return %arg0, %c0_i32, %c0_i32_0, %c0_i32_1 : i32, i32, i32, i32
  }
  func.func @transform_3(%arg0: i32, %arg1: i32) -> (i32, i32, i32) {
    %c0_i32 = arith.constant 0 : i32
    %c0_i32_0 = arith.constant 0 : i32
    return %arg0, %arg1, %c0_i32 : i32, i32, i32
  }
}

</mosaic_0001>

<bundles_post_ra>
// kernel: tpu_custom_call.1
= control target key start
LH: loop header
LB: loop body
LE: loop exit
PB: predicated region body
PF: predicated region fallthrough
CT: control target
= control target key end

     0   :  { %8 = vsyncpa [#allocation3], 0  ;;  %s1931_s0 = inlined_call_operand.hbm [shape: f32[2,8,128], index: 0, kind: input, shape index: {}]   ;;  %s1932_s1 = inlined_call_operand.hbm [shape: f32[2,4,32,8], index: 1, kind: input, shape index: {}]   ;;  %s1933_s2 = inlined_call_operand.hbm [shape: f32[2,4,8,33], index: 2, kind: input, shape index: {}]   ;;  %s1934_s3 = inlined_call_operand.hbm [shape: f32[2,8,128], index: 3, kind: output, shape index: {}]  }
   0x1   :  { %10 = vsyncpa [#allocation3 + $0x1], 0 }
   0x2   :  { %11 = vsyncpa [#allocation6], 0 }
   0x3   :  { %12 = vsyncpa [#allocation4], 0 }
   0x4   :  { %14 = vsyncpa [#allocation4 + $0x1], 0  ;;  %s1593_s12 = smov 0   ;;  %s1595_s13 = smov 0  }
   0x5   :  { %s1597_s14 = smov 0   ;;  %s1599_s15 = smov 0  }
   0x6   :  { %s1601_s16 = smov 0   ;;  %s1603_s17 = smov 0  }
   0x7 LB: > { %s1121_s18 = sadd.s32 4294967295, %s1558_s17   ;;  %s1122_s19 = sadd.s32 4294967294, %s1558_s17   ;;  %s1558_s17 = sphi %s1603_s17, %s20_s17   ;;  %s1554_s16 = sphi %s1601_s16, %s1953_s16   ;;  %s1550_s15 = sphi %s1599_s15, %s1952_s15   ;;  %s1546_s14 = sphi %s1597_s14, %s1951_s14   ;;  %s1542_s13 = sphi %s1595_s13, %s1950_s13   ;;  %s1538_s12 = sphi %s1593_s12, %s1949_s12  }
   0x8   : > { %p54_p0 = scmp.ne.s32.totalorder %s1542_s13, %s1538_s12  ;;  %p55_p1 = scmp.eq.s32.totalorder %s1121_s18, 0 }
   0x9   : > { %p138_p2 = scmp.eq.s32.totalorder %s1122_s19, 1  ;;  %p1123_p3 = scmp.ge.s32.totalorder %s1558_s17, 1 }
   0xa   : > { %p1630_p4 = por %p55_p1, %p54_p0  ;;  %p145_p5 = scmp.lt.s32.totalorder %s1558_s17, 3 }
   0xb   : > { %p1635_p6 = por %p138_p2, %p54_p0  ;;  %s1146_s22 = sshll.u32 %s1550_s15, 11 }
   0xc   : > { %s1938_s20 = scalar_select %p1630_p4, 1, 0 }
   0xd   : > { %s1939_s21 = scalar_select %p1635_p6, 1, 0 }
   0xe   : > { %p1640_p7 = pnand %p1123_p3, %p145_p5  ;;  %s1647_s26 = scalar_lea.hbm %s1932_s1, %s1146_s22 }
   0xf   : > { %s1560_s27 = smov [#allocation5]   ;;  %s1147_s30 = sshll.u32 %s1550_s15, 9 }
  0x10   : > { %s1940_s23 = scalar_select %p1640_p7, 1, 0 }
  0x11   : > { %p1272_p8 = pneg %p1640_p7  ;;  %s160_s28 = sshll.u32 %s1560_s27, 4  ;;  %s1651_s28 = int_to_ptr.vmem [resolvable:$true] %s160_s28 }
  0x12   : > { %s1663_s6 = scalar_lea.hbm %s1933_s2, %s1147_s30  ;;  %s1382_s7 = scalar_lea.hbm %s1647_s26, 2048 }
  0x13   : > { %p1655_p9 = pnand %p1272_p8, %p1630_p4  ;;  %p1383_p11 = scmp.ne.s32.totalorder %s1647_s26, %s1382_s7 }
  0x14   : > { %s1387_s10 = scalar_lea.hbm %s1932_s1, 4096  ;;  %p1388_p1 = scmp.lt.u32.totalorder %s1647_s26, %s1932_s1 }
  0x15   : > { %p1384_p12 = pneg %p1655_p9  ;;  %p1389_p2 = scmp.lt.u32.totalorder %s1387_s10, %s1382_s7 }
  0x16   : > { %p1391_p5 = scmp.lt.u32.totalorder %s1382_s7, %s1647_s26 }
  0x17   : > { %p1385_p13 = pnand %p1384_p12, %p1383_p11  ;;  %p1390_p3 = por %p1389_p2, %p1388_p1 }
  0x19   : > { %p1386_p0 = pneg %p1385_p13  ;;  %p1392_p8 = por %p1391_p5, %p1390_p3 }
  0x1b   : > { %p1393_p10 = pnand %p1392_p8, %p1386_p0 }
  0x1d   : > { %1396 = shalt.err (!%p1393_p10)
}
  0x1e   : > { %s1397_s22 = scalar_lea.vmem %s1651_s28, 2048  ;;  %p1405_p4 = scmp.lt.s32.totalorder %s1651_s28, %s1651_s28 }
  0x1f   : > { %p1398_p11 = scmp.ne.s32.totalorder %s1651_s28, %s1397_s22  ;;  %p1406_p7 = scmp.lt.s32.totalorder %s1397_s22, %s1397_s22 }
  0x21   : > { %p1400_p13 = pnand %p1398_p11, %p1384_p12  ;;  %p1407_p1 = por %p1406_p7, %p1405_p4 }
  0x23   : > { %p1401_p6 = pneg %p1400_p13 }
  0x25   : > { %p1408_p2 = pnand %p1407_p1, %p1401_p6 }
  0x27   : > { %1411 = shalt.err (!%p1408_p2)
}
  0x28   : > { %s1561_s24 = smov 128   ;;  %s1562_s25 = smov 8  }
  0x29   : > { %1275 = dma.hbm_to_vmem [thread:$0]  (!%p1655_p9), %s1647_s26, 2048, %s1651_s28, [#allocation6], %s1561_s24, %s1561_s24, %s1562_s25  }
  0x2a   : > { %s1563_s27 = smov [#allocation7]   ;;  %s1412_s4 = scalar_lea.hbm %s1663_s6, 512 }
  0x2b   : > { %s176_s30 = sshll.u32 %s1563_s27, 4  ;;  %p1413_p4 = scmp.ne.s32.totalorder %s1663_s6, %s1412_s4  ;;  %s177_s30 = int_to_ptr.vmem [resolvable:$true] %s176_s30 }
  0x2c   : > { %s1417_s8 = scalar_lea.hbm %s1933_s2, 1024  ;;  %p1418_p10 = scmp.lt.u32.totalorder %s1663_s6, %s1933_s2 }
  0x2d   : > { %p1415_p6 = pnand %p1413_p4, %p1384_p12  ;;  %p1419_p0 = scmp.lt.u32.totalorder %s1417_s8, %s1412_s4 }
  0x2e   : > { %p1421_p5 = scmp.lt.u32.totalorder %s1412_s4, %s1663_s6 }
  0x2f   : > { %p1416_p7 = pneg %p1415_p6  ;;  %p1420_p3 = por %p1419_p0, %p1418_p10 }
  0x31   : > { %p1422_p8 = por %p1421_p5, %p1420_p3 }
  0x33   : > { %p1423_p11 = pnand %p1422_p8, %p1416_p7 }
  0x35   : > { %1426 = shalt.err (!%p1423_p11)
}
  0x36   : > { %s1427_s26 = scalar_lea.vmem %s177_s30, 512  ;;  %p1435_p4 = scmp.lt.s32.totalorder %s177_s30, %s177_s30 }
  0x37   : > { %p1428_p13 = scmp.ne.s32.totalorder %s177_s30, %s1427_s26  ;;  %p1436_p6 = scmp.lt.s32.totalorder %s1427_s26, %s1427_s26 }
  0x39   : > { %p1430_p1 = pnand %p1428_p13, %p1384_p12  ;;  %p1437_p0 = por %p1436_p6, %p1435_p4 }
  0x3b   : > { %p1431_p2 = pneg %p1430_p1 }
  0x3d   : > { %p1438_p10 = pnand %p1437_p0, %p1431_p2 }
  0x3f   : > { %1441 = shalt.err (!%p1438_p10)
}
  0x40   : > { %1278 = dma.hbm_to_vmem [thread:$0]  (!%p1655_p9), %s1663_s6, 512, %s177_s30, [#allocation6], %s1561_s24, %s1561_s24, %s1562_s25  }
  0x41   : > { %s32_s28 = sadd.s32 1, %s1554_s16  ;;  %s41_s11 = sadd.s32 1, %s1546_s14 }
  0x42   : > { %p34_p12 = scmp.ge.s32.totalorder %s32_s28, 2  ;;  %p48_p7 = scmp.ne.s32.totalorder %s1546_s14, %s1542_s13 }
  0x43   : > { %p49_p3 = scmp.eq.s32.totalorder %s1558_s17, 0  ;;  %p132_p5 = scmp.eq.s32.totalorder %s1121_s18, 1 }
  0x44   : > { %s1955_s28 = smov (%p34_p12, %s32_s28), 0  ;;  %p1287_p9 = scmp.lt.s32.totalorder %s1558_s17, 2 }
  0x45   : > { %p1726_p8 = por %p49_p3, %p48_p7  ;;  %p1730_p11 = por %p132_p5, %p48_p7 }
  0x46   : > { %s36_s6 = ssub.s32 %s1554_s16, %s1955_s28  ;;  %s190_s22 = sand.u32 1, %s1546_s14  }
  0x47   : > { %p39_p13 = scmp.eq.s32.totalorder %s36_s6, 0  ;;  %s1129_s24 = sshll.u32 %s190_s22, 3 }
  0x48   : > { %s1130_s18 = sshll.u32 %s1554_s16, 7  ;;  %s194_s5 = scalar_lea.vmem [#allocation2], %s1129_s24 }
  0x49   : > { %s1739_s25 = scalar_select %p39_p13, %s1546_s14, %s41_s11  }
  0x4a   : > { %s1745_s4 = scalar_lea.hbm %s1931_s0, %s1130_s18  ;;  %s202_s7 = sshll.u32 %s194_s5, 4  ;;  %s1747_s7 = int_to_ptr.vmem [resolvable:$true] %s202_s7 }
  0x4b   : > { %p1751_p1 = pnand %p1287_p9, %p1726_p8  ;;  %s191_s9 = scalar_lea.sflag [#allocation3], %s190_s22 }
  0x4c   : > { %s1442_s10 = scalar_lea.hbm %s1745_s4, 128  ;;  %s1447_s6 = scalar_lea.hbm %s1931_s0, 256 }
  0x4d   : > { %p1443_p2 = scmp.ne.s32.totalorder %s1745_s4, %s1442_s10  ;;  %p1444_p4 = pneg %p1751_p1 }
  0x4e   : > { %p1448_p10 = scmp.lt.u32.totalorder %s1745_s4, %s1931_s0  ;;  %p1449_p12 = scmp.lt.u32.totalorder %s1447_s6, %s1442_s10 }
  0x4f   : > { %p1445_p6 = pnand %p1444_p4, %p1443_p2  ;;  %p1451_p3 = scmp.lt.u32.totalorder %s1442_s10, %s1745_s4 }
  0x50   : > { %p1450_p7 = por %p1449_p12, %p1448_p10 }
  0x51   : > { %p1446_p0 = pneg %p1445_p6 }
  0x52   : > { %p1452_p5 = por %p1451_p3, %p1450_p7 }
  0x54   : > { %p1453_p8 = pnand %p1452_p5, %p1446_p0 }
  0x56   : > { %1456 = shalt.err (!%p1453_p8)
}
  0x57   : > { %s1457_s22 = scalar_lea.vmem %s1747_s7, 128  ;;  %s1564_s18 = smov [#allocation2]  }
  0x58   : > { %p1458_p9 = scmp.ne.s32.totalorder %s1747_s7, %s1457_s22  ;;  %s1462_s27 = sshll.u32 %s1564_s18, 4  ;;  %s1463_s27 = int_to_ptr.vmem [resolvable:$false] %s1462_s27 }
  0x59   : > { %s1464_s30 = scalar_lea.vmem %s1463_s27, 256  ;;  %p1465_p6 = scmp.lt.s32.totalorder %s1747_s7, %s1463_s27 }
  0x5a   : > { %p1460_p13 = pnand %p1458_p9, %p1444_p4  ;;  %p1466_p10 = scmp.lt.s32.totalorder %s1464_s30, %s1457_s22 }
  0x5c   : > { %p1461_p2 = pneg %p1460_p13  ;;  %p1467_p12 = por %p1466_p10, %p1465_p6 }
  0x5e   : > { %p1468_p7 = pnand %p1467_p12, %p1461_p2 }
  0x60   : > { %1471 = shalt.err (!%p1468_p7)
}
  0x61   : > { %1282 = dma.hbm_to_vmem [thread:$0]  (!%p1751_p1), %s1745_s4, 128, %s1747_s7, %s191_s9  }
  0x62   : > { %p1945_p0 = scmp.ne.s32.totalorder %s1940_s23, 0 }
  0x63   : > { %s1783_s5 = sand.u32 (!%p1945_p0), 1, %s1542_s13   ;;  %p1946_p4 = scmp.ne.s32.totalorder (!%p1945_p0), %s1938_s20, 0 }
  0x64   : > { %211 = sbr.rel (%p1945_p0) target bundleno = 2247 (0x8c7), region = 32  ;;  %s1132_s10 = sshll.u32 (!%p1945_p0), %s1783_s5, 3 }
  0x65   : > { %s214_s26 = scalar_lea.sflag (!%p1945_p0), [#allocation3], %s1783_s5  ;;  %s217_s11 = scalar_lea.vmem (!%p1945_p0), [#allocation2], %s1132_s10 }
  0x6b   : > { %1525 = dma.done.wait (%p1946_p4), %s214_s26, 128  }
  0x6c   : > { %1527 = vsyncadd (%p1946_p4), %s214_s26, 4294967168 }
  0x6d   : > { %1529 = dma.done.wait (%p1946_p4), [#allocation6], 2560  }
  0x6e   : > { %1531 = vsyncadd (%p1946_p4), [#allocation6], 4294964736  ;;  %v1565_v0 = vmov 0.0|0.0   ;;  %vm1566_vm0 = vmmov 0   ;;  %v1567_v1 = vmov 0.0   ;;  %v249_v2 = vld [vmem:[#allocation5] sm:$0xff] }
  0x6f   : > { %1240 = vmatprep.subr.bf16.mxu0 %v1565_v0  ;;  %1184 = vmatprep.mubr.msk.f32.mxu0 %vm1566_vm0, %v1567_v1  ;;  %v250_v3 = vld [vmem:[#allocation5 + $0x8] sm:$0xff]  ;;  %v251_v4 = vld [vmem:[#allocation5 + $0x10] sm:$0xff]  ;;  %v252_v6 = vld [vmem:[#allocation5 + $0x18] sm:$0xff]  ;;  %vm254_vm1 = vcmask 261120   ;;  %vm328_vm2 = vcmask 64512   ;;  %s1568_s20 = smov 96  }
  0x70   : > { %1187 = vmatprep.subr.mxu1 %v1567_v1  ;;  %1189 = vmatprep.mubr.msk.f32.mxu1 %vm1566_vm0, %v1567_v1  ;;  %v1241_v5 = vpack.c.bf16 %v250_v3, %v249_v2  ;;  %v1244_v7 = vpack.c.bf16 %v252_v6, %v251_v4  ;;  %v1804_v8 = vld [vmem:[%s217_s11] sm:$0xff]  ;;  %s1569_s23 = smov 64   ;;  %v253_v17 = vld [vmem:[#allocation7] sm:$0xff]  ;;  %v435_v28 = vld [vmem:[#allocation5 + $0x28] sm:$0xff]  ;;  %s1570_s4 = smov 32   ;;  %vm621_vm3 = vcmask 523520  }
  0x71   : > { %440 = vrot.lane.b32.xlu1 %v1804_v8, %s1568_s20  ;;  %1188 = vmatpush3.msra.mxu1 %v253_v17  ;;  %v434_v27 = vld [vmem:[#allocation5 + $0x20] sm:$0xff]  ;;  %v436_v33 = vld [vmem:[#allocation5 + $0x30] sm:$0xff]  ;;  %v437_v34 = vld [vmem:[#allocation5 + $0x38] sm:$0xff]  ;;  %s1860_s7 = scalar_lea.vmem [#allocation8], %s1132_s10  ;;  %vm811_vm4 = vcmask 785920   ;;  %s1143_s8 = sshll.u32 %s1550_s15, 7 }
  0x72   : > { %1242 = vmatpush3.bf16.msra.mxu0 %v1241_v5  ;;  %1246 = vmatprep.subr.bf16.mxu1 %v1565_v0  ;;  %v1247_v31 = vpack.c.bf16 %v435_v28, %v434_v27  ;;  %v1250_v35 = vpack.c.bf16 %v437_v34, %v436_v33  ;;  %v624_v36 = vld [vmem:[#allocation5 + $0x40] sm:$0xff]  ;;  %v625_v37 = vld [vmem:[#allocation5 + $0x48] sm:$0xff]  ;;  %v626_v40 = vld [vmem:[#allocation5 + $0x50] sm:$0xff]  ;;  %v1571_v33 = vmov 32   ;;  %s1018_s9 = sshll.u32 %s1860_s7, 4  ;;  %vm1001_vm5 = vcmask 1048320   ;;  %s1881_s24 = scalar_lea.hbm %s1934_s3, %s1143_s8  ;;  %s1883_s9 = int_to_ptr.vmem [resolvable:$true] %s1018_s9 }
  0x73   : > { %1243 = vmatprep.subr.bf16.mxu0 %v1565_v0  ;;  %v1253_v39 = vpack.c.bf16 %v625_v37, %v624_v36  ;;  %v627_v41 = vld [vmem:[#allocation5 + $0x58] sm:$0xff]  ;;  %v439_v62 = vld [vmem:[#allocation7 + $0x8] sm:$0xff]  ;;  %1349 = vset.pattern.permute.xlu0 %v1571_v33  ;;  %s1004_s22 = scalar_lea.sflag [#allocation4], %s1783_s5  ;;  %s1472_s18 = scalar_lea.vmem %s1883_s9, 128 }
  0x74   : > { %v1256_v42 = vpack.c.bf16 %v627_v41, %v626_v40  ;;  %1348 = vset.pattern.permute.xlu1 %v1571_v33  ;;  %p1473_p1 = scmp.ne.s32.totalorder %s1883_s9, %s1472_s18  ;;  %s1572_s15 = smov [#allocation8]  }
  0x75   : > { %630 = vrot.lane.b32.xlu1 %v1804_v8, %s1569_s23  ;;  %s1476_s27 = sshll.u32 %s1572_s15, 4  ;;  %s1477_s27 = int_to_ptr.vmem [resolvable:$false] %s1476_s27 }
  0x76   : > { %1245 = vmatpush3.bf16.msra.mxu0 %v1244_v7  ;;  %p1474_p3 = pnand %p1473_p1, %p1730_p11  ;;  %s1478_s30 = scalar_lea.vmem %s1477_s27, 256 }
  0x77   : > { %1203 = vmatprep.subr.mxu0 %v1567_v1  ;;  %p1479_p8 = scmp.lt.s32.totalorder %s1883_s9, %s1477_s27  ;;  %p1480_p9 = scmp.lt.s32.totalorder %s1478_s30, %s1472_s18 }
  0x78   : > { %p1475_p5 = pneg %p1474_p3 }
  0x79   : > { %1185 = vmatmul.mubr.msk.f32.vlgmr.msra.gmra.mrb[0].mxu0 %vm254_vm1, %v1804_v8  ;;  %p1481_p13 = por %p1480_p9, %p1479_p8 }
  0x7a   : > { %1205 = vmatprep.mubr.msk.f32.mxu0 %vm1566_vm0, %v1567_v1  ;;  %1204 = vmatpush3.msra.mxu0 %v439_v62 }
  0x7b   : > { %1219 = vmatprep.subr.mxu0 %v1567_v1  ;;  %p1482_p2 = pnand %p1481_p13, %p1475_p5 }
  0xe3   : > { %v441_v38 = vpop.permute.xlu1 %440 }
  0xe7   : > { %v631_v43 = vpop.permute.xlu1 %630 }
 0x14c   : > { %v324_v9 = vpop.f32.mrb[0].mxu0 }
 0x14d   : > { %v1186_v10 = vpop.f32.mrb[1].mxu0  ;;  %v329_v11 = vsel %vm328_vm2, %v324_v9, -inf }
 0x14e   : > { %330 = vmax.xlane.f32.xlu0 %v329_v11 }
 0x1db   : > { %v331_v12 = vpop.xlane.xlu0 %330 }
 0x1dc   : > { %v332_v13 = vsub.f32 %v324_v9, %v331_v12 }
 0x1de   : > { %v333_v14 = vmul.f32 1.442695, %v332_v13  ;;  %v344_v19 = vmul.f32 5.0, %v332_v13 }
 0x1e0   : > { %1350 = vpow2.f32 %v333_v14  ;;  %v345_v20 = vmul.f32 1.442695, %v344_v19 }
 0x1ea   : > { %v1351_v15 = vpop.eup %1350 }
 0x1eb   : > { %v335_v16 = vsel %vm328_vm2, %v1351_v15, 0.0 }
 0x1ec   : > { %336 = vadd.xlane.f32.xlu0 %v335_v16 }
 0x279   : > { %v337_v18 = vpop.xlane.xlu0 %336 }
 0x27a   : > { %1352 = vrcp.f32 %v337_v18 }
 0x27b   : > { %1354 = vpow2.f32 %v345_v20  ;;  %v629_v20 = vld [vmem:[#allocation7 + $0x10] sm:$0xff] }
 0x284   : > { %v1353_v21 = vpop.eup %1352 }
 0x285   : > { %v339_v22 = vmul.f32 %v1353_v21, %v337_v18  ;;  %v1355_v29 = vpop.eup %1354 }
 0x287   : > { %v340_v23 = vsub.f32 2.0, %v339_v22 }
 0x289   : > { %v341_v24 = vmul.f32 %v1353_v21, %v340_v23  ;;  %v814_v23 = vld [vmem:[#allocation5 + $0x60] sm:$0xff] }
 0x28b   : > { %v342_v25 = vmul.f32 %v341_v24, %v341_v24  ;;  %v815_v24 = vld [vmem:[#allocation5 + $0x68] sm:$0xff] }
 0x28c   : > { %v1259_v27 = vpack.c.bf16 %v815_v24, %v814_v23 }
 0x28d   : > { %v343_v26 = vmul.f32 %v342_v25, %v342_v25 }
 0x28f   : > { %v347_v30 = vmul.f32 %v1355_v29, %v343_v26  ;;  %v816_v29 = vld [vmem:[#allocation5 + $0x70] sm:$0xff] }
 0x291   : > { %v348_v32 = vadd.f32 %v1351_v15, %v347_v30  ;;  %v817_v30 = vld [vmem:[#allocation5 + $0x78] sm:$0xff] }
 0x293   : > { %1190 = vmatmul.mubr.msk.f32.vlgmr.msra.gmra.mrb[0].mxu1 %vm328_vm2, %v348_v32 }
 0x294   : > { %1248 = vmatpush3.bf16.msra.mxu1 %v1247_v31  ;;  %1200 = vmatprep.mubr.msk.f32.mxu1 %vm1566_vm0, %v1567_v1  ;;  %v1262_v31 = vpack.c.bf16 %v817_v30, %v816_v29 }
 0x295   : > { %1249 = vmatprep.subr.bf16.mxu1 %v1565_v0 }
 0x298   : > { %1251 = vmatpush3.bf16.msra.mxu1 %v1250_v35 }
 0x299   : > { %1252 = vmatprep.subr.bf16.mxu1 %v1565_v0 }
 0x29b   : > { %1201 = vmatmul.mubr.msk.f32.vlgmr.msra.gmra.mrb[2].mxu1 %vm254_vm1, %v441_v38 }
 0x29c   : > { %1254 = vmatpush3.bf16.msra.mxu1 %v1253_v39  ;;  %1216 = vmatprep.mubr.msk.f32.mxu1 %vm1566_vm0, %v1567_v1 }
 0x29d   : > { %1255 = vmatprep.subr.bf16.mxu1 %v1565_v0 }
 0x2a0   : > { %1257 = vmatpush3.bf16.msra.mxu1 %v1256_v42 }
 0x2a1   : > { %1235 = vmatprep.subr.mxu1 %v1567_v1 }
 0x2a3   : > { %1217 = vmatmul.mubr.msk.f32.vlgmr.msra.gmra.mrb[4].mxu1 %vm254_vm1, %v631_v43 }
 0x2a4   : > { %1237 = vmatprep.mubr.msk.f32.mxu1 %vm1566_vm0, %v1567_v1 }
 0x366   : > { %v1831_v44 = vpop.f32.mrb[0].mxu1 }
 0x367   : > { %v1191_v45 = vpop.f32.mrb[1].mxu1 }
 0x36e   : > { %v510_v46 = vpop.f32.mrb[2].mxu1 }
 0x36f   : > { %v1202_v47 = vpop.f32.mrb[3].mxu1  ;;  %v514_v48 = vsel %vm328_vm2, %v510_v46, -inf }
 0x370   : > { %515 = vmax.xlane.f32.xlu0 %v514_v48 }
 0x376   : > { %v700_v49 = vpop.f32.mrb[4].mxu1 }
 0x377   : > { %v1218_v50 = vpop.f32.mrb[5].mxu1  ;;  %v704_v51 = vsel %vm328_vm2, %v700_v49, -inf }
 0x378   : > { %705 = vmax.xlane.f32.xlu1 %v704_v51 }
 0x3fd   : > { %v516_v52 = vpop.xlane.xlu0 %515 }
 0x3fe   : > { %v517_v53 = vsub.f32 %v510_v46, %v516_v52 }
 0x400   : > { %v518_v54 = vmul.f32 1.442695, %v517_v53  ;;  %v529_v2 = vmul.f32 5.0, %v517_v53 }
 0x402   : > { %1356 = vpow2.f32 %v518_v54  ;;  %v530_v3 = vmul.f32 1.442695, %v529_v2 }
 0x405   : > { %v706_v55 = vpop.xlane.xlu1 %705 }
 0x406   : > { %v707_v56 = vsub.f32 %v700_v49, %v706_v55 }
 0x408   : > { %v708_v57 = vmul.f32 1.442695, %v707_v56  ;;  %v719_v6 = vmul.f32 5.0, %v707_v56 }
 0x40a   : > { %1358 = vpow2.f32 %v708_v57  ;;  %v720_v10 = vmul.f32 1.442695, %v719_v6 }
 0x40c   : > { %v1357_v58 = vpop.eup %1356 }
 0x40d   : > { %v520_v59 = vsel %vm328_vm2, %v1357_v58, 0.0 }
 0x40e   : > { %521 = vadd.xlane.f32.xlu0 %v520_v59 }
 0x414   : > { %v1359_v60 = vpop.eup %1358 }
 0x415   : > { %v710_v61 = vsel %vm328_vm2, %v1359_v60, 0.0 }
 0x416   : > { %711 = vadd.xlane.f32.xlu0 %v710_v61 }
 0x42c   : > { %820 = vrot.lane.b32.xlu0 %v1804_v8, %s1570_s4 }
 0x49b   : > { %v522_v63 = vpop.xlane.xlu0 %521 }
 0x49c   : > { %1360 = vrcp.f32 %v522_v63 }
 0x4a3   : > { %v712_v4 = vpop.xlane.xlu0 %711 }
 0x4a4   : > { %1362 = vrcp.f32 %v712_v4 }
 0x4a5   : > { %1364 = vpow2.f32 %v530_v3 }
 0x4a6   : > { %v1361_v5 = vpop.eup %1360  ;;  %1366 = vpow2.f32 %v720_v10 }
 0x4a7   : > { %v524_v7 = vmul.f32 %v1361_v5, %v522_v63  ;;  %v821_v32 = vpop.permute.xlu0 %820  ;;  %1368 = vrcp.f32 %v1831_v44 }
 0x4a9   : > { %v525_v9 = vsub.f32 2.0, %v524_v7 }
 0x4ab   : > { %v526_v11 = vmul.f32 %v1361_v5, %v525_v9 }
 0x4ad   : > { %v527_v12 = vmul.f32 %v526_v11, %v526_v11 }
 0x4ae   : > { %v1363_v13 = vpop.eup %1362 }
 0x4af   : > { %v528_v8 = vmul.f32 %v527_v12, %v527_v12  ;;  %v714_v14 = vmul.f32 %v1363_v13, %v712_v4  ;;  %v1365_v15 = vpop.eup %1364 }
 0x4b0   : > { %v1367_v25 = vpop.eup %1366 }
 0x4b1   : > { %v532_v16 = vmul.f32 %v1365_v15, %v528_v8  ;;  %v715_v17 = vsub.f32 2.0, %v714_v14  ;;  %v1369_v39 = vpop.eup %1368 }
 0x4b2   : > { %v423_v40 = vmul.f32 %v1369_v39, %v1831_v44 }
 0x4b3   : > { %v533_v18 = vadd.f32 %v1357_v58, %v532_v16  ;;  %v716_v19 = vmul.f32 %v1363_v13, %v715_v17  ;;  %v819_v58 = vld [vmem:[#allocation7 + $0x18] sm:$0xff] }
 0x4b4   : > { %v424_v41 = vsub.f32 2.0, %v423_v40  ;;  %1236 = vmatpush3.msra.mxu1 %v819_v58 }
 0x4b5   : > { %v717_v21 = vmul.f32 %v716_v19, %v716_v19  ;;  %1206 = vmatmul.mubr.msk.f32.vlgmr.msra.gmra.mrb[2].mxu0 %vm328_vm2, %v533_v18 }
 0x4b6   : > { %1220 = vmatpush3.msra.mxu0 %v629_v20  ;;  %1221 = vmatprep.mubr.msk.f32.mxu0 %vm1566_vm0, %v1567_v1  ;;  %v425_v42 = vmul.f32 %v1369_v39, %v424_v41 }
 0x4b7   : > { %v718_v22 = vmul.f32 %v717_v21, %v717_v21  ;;  %1258 = vmatprep.subr.bf16.mxu0 %v1565_v0 }
 0x4b9   : > { %v722_v26 = vmul.f32 %v1367_v25, %v718_v22 }
 0x4bb   : > { %v723_v28 = vadd.f32 %v1359_v60, %v722_v26 }
 0x4bd   : > { %1222 = vmatmul.mubr.msk.f32.vlgmr.msra.gmra.mrb[4].mxu0 %vm328_vm2, %v723_v28 }
 0x4be   : > { %1260 = vmatpush3.bf16.msra.mxu0 %v1259_v27  ;;  %1232 = vmatprep.mubr.msk.f32.mxu0 %vm1566_vm0, %v1567_v1 }
 0x4bf   : > { %1261 = vmatprep.subr.bf16.mxu0 %v1565_v0 }
 0x4c2   : > { %1263 = vmatpush3.bf16.msra.mxu0 %v1262_v31 }
 0x4c5   : > { %1233 = vmatmul.mubr.msk.f32.vlgmr.msra.gmra.mrb[6].mxu0 %vm254_vm1, %v821_v32 }
 0x588   : > { %v1849_v34 = vpop.f32.mrb[2].mxu0 }
 0x589   : > { %v1207_v35 = vpop.f32.mrb[3].mxu0 }
 0x590   : > { %v1851_v36 = vpop.f32.mrb[4].mxu0 }
 0x591   : > { %v1223_v37 = vpop.f32.mrb[5].mxu0 }
 0x598   : > { %v890_v38 = vpop.f32.mrb[6].mxu0 }
 0x599   : > { %v1234_v1 = vpop.f32.mrb[7].mxu0  ;;  %v894_v0 = vsel %vm328_vm2, %v890_v38, -inf }
 0x59a   : > { %895 = vmax.xlane.f32.xlu0 %v894_v0 }
 0x5b0   : > { %428 = vperm.xlu0 %1349, %v425_v42  }
 0x627   : > { %v896_v43 = vpop.xlane.xlu0 %895 }
 0x628   : > { %v897_v45 = vsub.f32 %v890_v38, %v896_v43 }
 0x62a   : > { %v898_v46 = vmul.f32 1.442695, %v897_v45  ;;  %v909_v60 = vmul.f32 5.0, %v897_v45 }
 0x62c   : > { %1370 = vpow2.f32 %v898_v46  ;;  %v910_v61 = vmul.f32 1.442695, %v909_v60 }
 0x62d   : > { %1372 = vrcp.f32 %v1849_v34 }
 0x62e   : > { %1374 = vrcp.f32 %v1851_v36 }
 0x62f   : > { %v429_v47 = vpop.permute.xlu0 %428 }
 0x630   : > { %v431_v48 = vmul.f32 %v429_v47, %v1831_v44 }
 0x632   : > { %432 = vst.msk [vmem:[%s1860_s7] sm:$0xff] %vm254_vm1, %v431_v48 }
 0x636   : > { %v1371_v49 = vpop.eup %1370 }
 0x637   : > { %v900_v50 = vsel %vm328_vm2, %v1371_v49, 0.0  ;;  %v1373_v51 = vpop.eup %1372 }
 0x638   : > { %901 = vadd.xlane.f32.xlu1 %v900_v50  ;;  %v608_v52 = vmul.f32 %v1373_v51, %v1849_v34  ;;  %v1375_v53 = vpop.eup %1374 }
 0x639   : > { %v798_v44 = vmul.f32 %v1375_v53, %v1851_v36 }
 0x63a   : > { %v609_v54 = vsub.f32 2.0, %v608_v52 }
 0x63b   : > { %v799_v55 = vsub.f32 2.0, %v798_v44 }
 0x63c   : > { %v610_v56 = vmul.f32 %v1373_v51, %v609_v54 }
 0x63d   : > { %v800_v57 = vmul.f32 %v1375_v53, %v799_v55 }
 0x649   : > { %613 = vperm.xlu1 %1348, %v610_v56  }
 0x64d   : > { %803 = vperm.xlu1 %1348, %v800_v57  }
 0x6c5   : > { %v902_v59 = vpop.xlane.xlu1 %901 }
 0x6c6   : > { %1376 = vrcp.f32 %v902_v59 }
 0x6c7   : > { %1378 = vpow2.f32 %v910_v61 }
 0x6c9   : > { %v614_v14 = vpop.permute.xlu1 %613 }
 0x6ca   : > { %v616_v16 = vmul.f32 %v614_v14, %v1849_v34 }
 0x6cd   : > { %v804_v17 = vpop.permute.xlu1 %803 }
 0x6ce   : > { %v806_v18 = vmul.f32 %v804_v17, %v1851_v36 }
 0x6d0   : > { %v1377_v62 = vpop.eup %1376 }
 0x6d1   : > { %v904_v63 = vmul.f32 %v1377_v62, %v902_v59  ;;  %v1379_v6 = vpop.eup %1378 }
 0x6d3   : > { %v905_v2 = vsub.f32 2.0, %v904_v63 }
 0x6d5   : > { %v906_v3 = vmul.f32 %v1377_v62, %v905_v2 }
 0x6d7   : > { %v907_v4 = vmul.f32 %v906_v3, %v906_v3 }
 0x6d9   : > { %v908_v5 = vmul.f32 %v907_v4, %v907_v4 }
 0x6db   : > { %v912_v7 = vmul.f32 %v1379_v6, %v908_v5 }
 0x6dd   : > { %v913_v9 = vadd.f32 %v1371_v49, %v912_v7 }
 0x6df   : > { %1238 = vmatmul.mubr.msk.f32.vlgmr.msra.gmra.mrb[6].mxu1 %vm328_vm2, %v913_v9 }
 0x7b2   : > { %v983_v10 = vpop.f32.mrb[6].mxu1 }
 0x7b3   : > { %1380 = vrcp.f32 %v983_v10  ;;  %v1239_v11 = vpop.f32.mrb[7].mxu1 }
 0x7bd   : > { %v1381_v12 = vpop.eup %1380 }
 0x7be   : > { %v988_v13 = vmul.f32 %v1381_v12, %v983_v10 }
 0x7c0   : > { %v989_v8 = vsub.f32 2.0, %v988_v13 }
 0x7c2   : > { %v990_v15 = vmul.f32 %v1381_v12, %v989_v8 }
 0x7c4   : > { %993 = vperm.xlu1 %1348, %v990_v15  }
 0x7c8   : > { %618 = vrot.lane.b32.xlu1 %v616_v16, %s1570_s4 }
 0x7cc   : > { %808 = vrot.lane.b32.xlu1 %v806_v18, %s1569_s23 }
 0x843   : > { %v994_v19 = vpop.permute.xlu1 %993 }
 0x844   : > { %v996_v20 = vmul.f32 %v994_v19, %v983_v10 }
 0x846   : > { %998 = vrot.lane.b32.xlu1 %v996_v20, %s1568_s20 }
 0x847   : > { %v619_v21 = vpop.permute.xlu1 %618 }
 0x848   : > { %622 = vst.msk [vmem:[%s1860_s7] sm:$0xff] %vm621_vm3, %v619_v21 }
 0x84b   : > { %v809_v22 = vpop.permute.xlu1 %808 }
 0x84c   : > { %812 = vst.msk [vmem:[%s1860_s7] sm:$0xff] %vm811_vm4, %v809_v22 }
 0x8b8   : > { %v999_v23 = vpop.permute.xlu1 %998 }
 0x8b9   : > { %1002 = vst.msk [vmem:[%s1860_s7] sm:$0xff] %vm1001_vm5, %v999_v23 }
 0x8ba   : > { %1485 = shalt.err (!%p1482_p2)
}
 0x8bb   : > { %s1486_s5 = scalar_lea.hbm %s1881_s24, 128  ;;  %s1490_s11 = scalar_lea.hbm %s1934_s3, 256 }
 0x8bc   : > { %p1487_p6 = scmp.ne.s32.totalorder %s1881_s24, %s1486_s5  ;;  %p1491_p7 = scmp.lt.u32.totalorder %s1881_s24, %s1934_s3 }
 0x8bd   : > { %p1492_p0 = scmp.lt.u32.totalorder %s1490_s11, %s1486_s5  ;;  %p1494_p1 = scmp.lt.u32.totalorder %s1486_s5, %s1881_s24 }
 0x8be   : > { %p1488_p10 = pnand %p1487_p6, %p1730_p11 }
 0x8bf   : > { %p1493_p4 = por %p1492_p0, %p1491_p7 }
 0x8c0   : > { %p1489_p12 = pneg %p1488_p10 }
 0x8c1   : > { %p1495_p3 = por %p1494_p1, %p1493_p4 }
 0x8c3   : > { %p1496_p5 = pnand %p1495_p3, %p1489_p12 }
 0x8c5   : > { %1499 = shalt.err (!%p1496_p5)
}
 0x8c6   : > { %1270 = dma.vmem_to_hbm [thread:$0]  (%p1730_p11), %s1883_s9, 128, %s1881_s24, %s1004_s22  }
 0x8c7 PF: > { %s1030_s4 = sand.u32 1, %s1538_s12   ;;  %p1947_p8 = scmp.ne.s32.totalorder %s1939_s21, 0 }
 0x8c8   : > { %p1948_p9 = scmp.ge.s32.totalorder %s1558_s17, 2  ;;  %s1031_s7 = scalar_lea.sflag [#allocation4], %s1030_s4 }
 0x8ca   : > { %p1284_p13 = pnand %p1948_p9, %p1947_p8 }
 0x8cc   : > { %1533 = dma.done.wait (!%p1284_p13), %s1031_s7, 128  }
 0x8cd   : > { %1535 = vsyncadd (!%p1284_p13), %s1031_s7, 4294967168  ;;  %s20_s17 = sadd.s32 1, %s1558_s17   ;;  %s1949_s12 = smov %s1542_s13 }
 0x8ce   : > { %p17_p2 = scmp.ge.s32.totalorder %s20_s17, 4   ;;  %s1950_s13 = smov %s1546_s14 }
 0x8cf   : > { %s1951_s14 = smov %s1739_s25  ;;  %s1952_s15 = smov %s1554_s16 }
 0x8d0   : > { %s1953_s16 = smov %s1955_s28  ;;  %19 = sbr.rel (!%p17_p2) target bundleno = 7 (0x7), region = 93 }
 0x8d7   :  { %1036 = vsyncpa [#allocation3], 1 }
 0x8d8   :  { %1038 = vsyncpa [#allocation3 + $0x1], 1 }
 0x8d9   :  { %1039 = vsyncpa [#allocation6], 1 }
 0x8da   :  { %1040 = vsyncpa [#allocation4], 1 }
 0x8db   :  { %1042 = vsyncpa [#allocation4 + $0x1], 1 }

// kernel: tpu_custom_call.1
= control target key start
LH: loop header
LB: loop body
LE: loop exit
PB: predicated region body
PF: predicated region fallthrough
CT: control target
= control target key end

     0   :  { %s2026_s0 = inlined_call_operand.hbm [shape: f32[2,8,128], index: 0, kind: input, shape index: {}]   ;;  %s2027_s1 = inlined_call_operand.hbm [shape: f32[2,4,32,8], index: 1, kind: input, shape index: {}]   ;;  %s2028_s2 = inlined_call_operand.hbm [shape: f32[2,4,8,33], index: 2, kind: input, shape index: {}]   ;;  %s2029_s3 = inlined_call_operand.hbm [shape: f32[2,8,128], index: 3, kind: output, shape index: {}]  }
   0x1   :  { %2037 = sst [smem:[#allocation13_spill]] %s2026_s0 }
   0x2   :  { %2038 = sst [smem:[#allocation14_spill]] %s2027_s1 }
   0x3   :  { %8 = vsyncpa [#allocation3], 0 }
   0x4   :  { %10 = vsyncpa [#allocation3 + $0x1], 0 }
   0x5   :  { %11 = vsyncpa [#allocation6], 0 }
   0x6   :  { %13 = vsyncpa [#allocation6 + $0x1], 0 }
   0x7   :  { %14 = vsyncpa [#allocation4], 0 }
   0x8   :  { %16 = vsyncpa [#allocation4 + $0x1], 0  ;;  %s1661_s12 = smov 0   ;;  %s1663_s13 = smov 0  }
   0x9   :  { %s1665_s14 = smov 0   ;;  %s1667_s15 = smov 0  }
   0xa   :  { %s1669_s16 = smov 0   ;;  %s1671_s17 = smov 0  }
   0xb LB: > { %s1692_s18 = sadd.s32 4294967295, %s1626_s17   ;;  %s1174_s19 = sadd.s32 4294967294, %s1626_s17   ;;  %s1626_s17 = sphi %s1671_s17, %s22_s17   ;;  %s1622_s16 = sphi %s1669_s16, %s2063_s16   ;;  %s1618_s15 = sphi %s1667_s15, %s2062_s15   ;;  %s1614_s14 = sphi %s1665_s14, %s2061_s14   ;;  %s1610_s13 = sphi %s1663_s13, %s2060_s13   ;;  %s1606_s12 = sphi %s1661_s12, %s2059_s12  }
   0xc   : > { %s34_s20 = sadd.s32 1, %s1622_s16  ;;  %s43_s21 = sadd.s32 1, %s1614_s14 }
   0xd   : > { %p36_p0 = scmp.ge.s32.totalorder %s34_s20, 2  ;;  %p50_p1 = scmp.ne.s32.totalorder %s1614_s14, %s1610_s13 }
   0xe   : > { %p51_p2 = scmp.eq.s32.totalorder %s1626_s17, 0  ;;  %p56_p3 = scmp.ne.s32.totalorder %s1610_s13, %s1606_s12 }
   0xf   : > { %s2065_s20 = smov (%p36_p0, %s34_s20), 0  ;;  %p57_p5 = scmp.eq.s32.totalorder %s1692_s18, 0 }
  0x10   : > { %2039 = sst [smem:[#allocation12_spill]] %s2065_s20  ;;  %p1704_p4 = por %p51_p2, %p50_p1 }
  0x11   : > { %s38_s23 = ssub.s32 %s1622_s16, %s2065_s20  ;;  %p134_p6 = scmp.eq.s32.totalorder %s1692_s18, 1 }
  0x12   : > { %p41_p7 = scmp.eq.s32.totalorder %s38_s23, 0  ;;  %p1712_p8 = por %p57_p5, %p56_p3 }
  0x13   : > { %p1716_p9 = por %p134_p6, %p50_p1  ;;  %p140_p10 = scmp.eq.s32.totalorder %s1174_s19, 1 }
  0x14   : > { %s2041_s24 = scalar_select %p1712_p8, 1, 0 }
  0x15   : > { %s2042_s25 = scalar_select %p1716_p9, 1, 0 }
  0x16   : > { %s1721_s26 = scalar_select %p41_p7, %s1614_s14, %s43_s21  }
  0x17   : > { %p1723_p11 = por %p140_p10, %p56_p3  ;;  %p1357_p13 = scmp.lt.s32.totalorder %s1626_s17, 2 }
  0x18   : > { %s1730_s28 = sand.u32 1, %s1614_s14   ;;  %s179_s29 = sand.u32 1, %s1626_s17  }
  0x19   : > { %s2043_s27 = scalar_select %p1723_p11, 1, 0 }
  0x1a   : > { %s1179_s30 = sshll.u32 %s1730_s28, 7  ;;  %p1736_p0 = pnand %p1357_p13, %p1704_p4 }
  0x1b   : > { %s1217_s5 = sshll.u32 %s1622_s16, 11  ;;  %s2045_s1 = sld [smem:[#allocation14_spill]] }
  0x1c   : > { %s2044_s4 = scalar_select %p1736_p0, 1, 0 }
  0x1d   : > { %s183_s9 = scalar_lea.vmem [#allocation5], %s1179_s30  ;;  %s1748_s11 = scalar_lea.sflag [#allocation6], %s179_s29 }
  0x1e   : > { %s190_s10 = sshll.u32 %s183_s9, 4  ;;  %p1754_p2 = pneg %p1736_p0  ;;  %s1746_s10 = int_to_ptr.vmem [resolvable:$true] %s190_s10 }
  0x21   : > { %s1744_s8 = scalar_lea.hbm %s2045_s1, %s1217_s5  ;;  %s1455_s30 = scalar_lea.hbm %s2045_s1, 4096 }
  0x22   : > { %s1450_s19 = scalar_lea.hbm %s1744_s8, 2048  ;;  %p1456_p5 = scmp.lt.u32.totalorder %s1744_s8, %s2045_s1 }
  0x23   : > { %p1451_p1 = scmp.ne.s32.totalorder %s1744_s8, %s1450_s19  ;;  %p1457_p6 = scmp.lt.u32.totalorder %s1455_s30, %s1450_s19 }
  0x24   : > { %p1459_p10 = scmp.lt.u32.totalorder %s1450_s19, %s1744_s8 }
  0x25   : > { %p1453_p3 = pnand %p1754_p2, %p1451_p1  ;;  %p1458_p7 = por %p1457_p6, %p1456_p5 }
  0x27   : > { %p1454_p4 = pneg %p1453_p3  ;;  %p1460_p13 = por %p1459_p10, %p1458_p7 }
  0x29   : > { %p1461_p12 = pnand %p1460_p13, %p1454_p4 }
  0x2b   : > { %1464 = shalt.err (!%p1461_p12)
}
  0x2c   : > { %s1465_s29 = scalar_lea.vmem %s1746_s10, 2048  ;;  %s1628_s7 = smov [#allocation5]  }
  0x2d   : > { %p1466_p1 = scmp.ne.s32.totalorder %s1746_s10, %s1465_s29  ;;  %s1470_s9 = sshll.u32 %s1628_s7, 4  ;;  %s1471_s9 = int_to_ptr.vmem [resolvable:$false] %s1470_s9 }
  0x2e   : > { %s1472_s22 = scalar_lea.vmem %s1471_s9, 4096  ;;  %p1473_p9 = scmp.lt.s32.totalorder %s1746_s10, %s1471_s9 }
  0x2f   : > { %p1468_p3 = pnand %p1466_p1, %p1754_p2  ;;  %p1474_p8 = scmp.lt.s32.totalorder %s1472_s22, %s1465_s29 }
  0x31   : > { %p1469_p11 = pneg %p1468_p3  ;;  %p1475_p5 = por %p1474_p8, %p1473_p9 }
  0x33   : > { %p1476_p6 = pnand %p1475_p5, %p1469_p11 }
  0x35   : > { %1479 = shalt.err (!%p1476_p6)
}
  0x36   : > { %s2032_s19 = smov 128   ;;  %s2033_s23 = smov 8  }
  0x37   : > { %1349 = dma.hbm_to_vmem [thread:$0]  (!%p1736_p0), %s1744_s8, 2048, %s1746_s10, %s1748_s11, %s2032_s19, %s2032_s19, %s2033_s23  }
  0x38   : > { %p1185_p8 = scmp.ge.s32.totalorder %s1626_s17, 1  ;;  %p219_p9 = scmp.lt.s32.totalorder %s1626_s17, 3 }
  0x39   : > { %s1177_s5 = sshll.u32 %s1730_s28, 3  ;;  %s1178_s6 = sshll.u32 %s1622_s16, 7 }
  0x3a   : > { %p1783_p11 = pnand %p1185_p8, %p219_p9  ;;  %s2048_s0 = sld [smem:[#allocation13_spill]] }
  0x3b   : > { %s164_s22 = scalar_lea.vmem [#allocation2], %s1177_s5  ;;  %s161_s10 = scalar_lea.sflag [#allocation3], %s1730_s28 }
  0x3c   : > { %s2047_s30 = scalar_select %p1783_p11, 1, 0 }
  0x3d   : > { %s172_s1 = sshll.u32 %s164_s22, 4  ;;  %s173_s1 = int_to_ptr.vmem [resolvable:$true] %s172_s1 }
  0x40   : > { %s1792_s9 = scalar_lea.hbm %s2048_s0, %s1178_s6  ;;  %s1485_s29 = scalar_lea.hbm %s2048_s0, 256 }
  0x41   : > { %s1480_s19 = scalar_lea.hbm %s1792_s9, 128  ;;  %p1486_p10 = scmp.lt.u32.totalorder %s1792_s9, %s2048_s0 }
  0x42   : > { %p1481_p12 = scmp.ne.s32.totalorder %s1792_s9, %s1480_s19  ;;  %p1487_p13 = scmp.lt.u32.totalorder %s1485_s29, %s1480_s19 }
  0x43   : > { %p1489_p3 = scmp.lt.u32.totalorder %s1480_s19, %s1792_s9 }
  0x44   : > { %p1483_p4 = pnand %p1481_p12, %p1754_p2  ;;  %p1488_p1 = por %p1487_p13, %p1486_p10 }
  0x46   : > { %p1484_p7 = pneg %p1483_p4  ;;  %p1490_p5 = por %p1489_p3, %p1488_p1 }
  0x48   : > { %p1491_p6 = pnand %p1490_p5, %p1484_p7 }
  0x4a   : > { %1494 = shalt.err (!%p1491_p6)
}
  0x4b   : > { %s1495_s5 = scalar_lea.vmem %s173_s1, 128  ;;  %s1631_s22 = smov [#allocation2]  }
  0x4c   : > { %p1496_p8 = scmp.ne.s32.totalorder %s173_s1, %s1495_s5  ;;  %s1500_s8 = sshll.u32 %s1631_s22, 4  ;;  %s1501_s8 = int_to_ptr.vmem [resolvable:$false] %s1500_s8 }
  0x4d   : > { %s1502_s20 = scalar_lea.vmem %s1501_s8, 256  ;;  %p1503_p4 = scmp.lt.s32.totalorder %s173_s1, %s1501_s8 }
  0x4e   : > { %p1498_p9 = pnand %p1496_p8, %p1754_p2  ;;  %p1504_p11 = scmp.lt.s32.totalorder %s1502_s20, %s1495_s5 }
  0x50   : > { %p1499_p12 = pneg %p1498_p9  ;;  %p1505_p0 = por %p1504_p11, %p1503_p4 }
  0x52   : > { %p1506_p10 = pnand %p1505_p0, %p1499_p12 }
  0x54   : > { %1509 = shalt.err (!%p1506_p10)
}
  0x55   : > { %p2049_p13 = scmp.ne.s32.totalorder %s2044_s4, 0  ;;  %s1218_s19 = sshll.u32 %s1622_s16, 9 }
  0x56   : > { %s2050_s23 = sshll.u32 %s1730_s28, 5  ;;  %s1819_s0 = scalar_lea.hbm %s2028_s2, %s1218_s19 }
  0x57   : > { %1346 = dma.hbm_to_vmem [thread:$0]  (!%p2049_p13), %s1792_s9, 128, %s173_s1, %s161_s10  }
  0x58   : > { %s204_s29 = scalar_lea.vmem [#allocation7], %s2050_s23  ;;  %s1510_s8 = scalar_lea.hbm %s1819_s0, 512 }
  0x59   : > { %s211_s6 = sshll.u32 %s204_s29, 4  ;;  %p1511_p0 = scmp.ne.s32.totalorder %s1819_s0, %s1510_s8  ;;  %s1821_s6 = int_to_ptr.vmem [resolvable:$true] %s211_s6 }
  0x5a   : > { %s1515_s9 = scalar_lea.hbm %s2028_s2, 1024  ;;  %p1516_p1 = scmp.lt.u32.totalorder %s1819_s0, %s2028_s2 }
  0x5b   : > { %p1513_p11 = pnand %p1511_p0, %p1754_p2  ;;  %p1517_p3 = scmp.lt.u32.totalorder %s1515_s9, %s1510_s8 }
  0x5c   : > { %p1519_p6 = scmp.lt.u32.totalorder %s1510_s8, %s1819_s0 }
  0x5d   : > { %p1514_p7 = pneg %p1513_p11  ;;  %p1518_p5 = por %p1517_p3, %p1516_p1 }
  0x5f   : > { %p1520_p8 = por %p1519_p6, %p1518_p5 }
  0x61   : > { %p1521_p9 = pnand %p1520_p8, %p1514_p7 }
  0x63   : > { %1524 = shalt.err (!%p1521_p9)
}
  0x64   : > { %s1525_s20 = scalar_lea.vmem %s1821_s6, 512  ;;  %s1632_s19 = smov [#allocation7]  }
  0x65   : > { %p1526_p12 = scmp.ne.s32.totalorder %s1821_s6, %s1525_s20  ;;  %s1530_s23 = sshll.u32 %s1632_s19, 4  ;;  %s1531_s23 = int_to_ptr.vmem [resolvable:$false] %s1530_s23 }
  0x66   : > { %s1532_s29 = scalar_lea.vmem %s1531_s23, 1024  ;;  %p1533_p0 = scmp.lt.s32.totalorder %s1821_s6, %s1531_s23 }
  0x67   : > { %p1528_p4 = pnand %p1526_p12, %p1754_p2  ;;  %p1534_p11 = scmp.lt.s32.totalorder %s1532_s29, %s1525_s20 }
  0x69   : > { %p1529_p10 = pneg %p1528_p4  ;;  %p1535_p1 = por %p1534_p11, %p1533_p0 }
  0x6b   : > { %p1536_p3 = pnand %p1535_p1, %p1529_p10 }
  0x6d   : > { %1539 = shalt.err (!%p1536_p3)
}
  0x6e   : > { %s2051_s7 = smov 8   ;;  %s2052_s22 = smov 128  }
  0x6f   : > { %1352 = dma.hbm_to_vmem [thread:$0]  (!%p2049_p13), %s1819_s0, 512, %s1821_s6, %s1748_s11, %s2052_s22, %s2052_s22, %s2051_s7  }
  0x70   : > { %p2053_p2 = scmp.ne.s32.totalorder %s2047_s30, 0 }
  0x71   : > { %s1851_s21 = sand.u32 (!%p2053_p2), 1, %s1610_s13   ;;  %p2054_p7 = scmp.ne.s32.totalorder (!%p2053_p2), %s2041_s24, 0 }
  0x72   : > { %223 = sbr.rel (%p2053_p2) target bundleno = 2261 (0x8d5), region = 32  ;;  %s1186_s8 = sshll.u32 (!%p2053_p2), %s1851_s21, 3 }
  0x73   : > { %s226_s1 = scalar_lea.sflag (!%p2053_p2), [#allocation3], %s1851_s21  ;;  %s229_s4 = scalar_lea.vmem (!%p2053_p2), [#allocation2], %s1186_s8 }
  0x79   : > { %1593 = dma.done.wait (%p2054_p7), %s226_s1, 128  }
  0x7a   : > { %1595 = vsyncadd (%p2054_p7), %s226_s1, 4294967168  ;;  %s234_s0 = sand.u32 1, %s1692_s18   ;;  %s1187_s11 = sshll.u32 %s1851_s21, 7 }
  0x7b   : > { %s235_s30 = scalar_lea.sflag [#allocation6], %s234_s0  ;;  %s1863_s6 = scalar_lea.vmem [#allocation5], %s1187_s11 }
  0x7c   : > { %1597 = dma.done.wait (%p2054_p7), %s235_s30, 2560  }
  0x7d   : > { %1599 = vsyncadd (%p2054_p7), %s235_s30, 4294964736  ;;  %v1633_v0 = vmov 0.0|0.0   ;;  %vm1634_vm0 = vmmov 0   ;;  %v1635_v1 = vmov 0.0   ;;  %v281_v2 = vld [vmem:[%s1863_s6] sm:$0xff]  ;;  %v282_v3 = vld [vmem:[%s1863_s6 + $0x8] sm:$0xff] }
  0x7e   : > { %1311 = vmatprep.subr.bf16.mxu0 %v1633_v0  ;;  %1255 = vmatprep.mubr.msk.f32.mxu0 %vm1634_vm0, %v1635_v1  ;;  %v283_v4 = vld [vmem:[%s1863_s6 + $0x10] sm:$0xff]  ;;  %v1312_v5 = vpack.c.bf16 %v282_v3, %v281_v2  ;;  %v284_v6 = vld [vmem:[%s1863_s6 + $0x18] sm:$0xff]  ;;  %vm286_vm1 = vcmask 261120   ;;  %vm360_vm2 = vcmask 64512   ;;  %s1636_s18 = smov 96   ;;  %s1637_s24 = smov 64  }
  0x7f   : > { %1258 = vmatprep.subr.mxu1 %v1635_v1  ;;  %1260 = vmatprep.mubr.msk.f32.mxu1 %vm1634_vm0, %v1635_v1  ;;  %v1315_v7 = vpack.c.bf16 %v284_v6, %v283_v4  ;;  %v1880_v8 = vld [vmem:[%s229_s4] sm:$0xff]  ;;  %s1188_s28 = sshll.u32 %s1851_s21, 5  ;;  %v1192_v27 = vld [vmem:[%s1863_s6 + $0x20] sm:$0xff]  ;;  %v1193_v28 = vld [vmem:[%s1863_s6 + $0x28] sm:$0xff]  ;;  %s1638_s10 = smov 32   ;;  %vm653_vm3 = vcmask 523520  }
  0x80   : > { %1313 = vmatpush3.bf16.msra.mxu0 %v1312_v5  ;;  %472 = vrot.lane.b32.xlu1 %v1880_v8, %s1636_s18  ;;  %s1894_s9 = scalar_lea.vmem [#allocation7], %s1188_s28  ;;  %v1318_v31 = vpack.c.bf16 %v1193_v28, %v1192_v27  ;;  %v1194_v33 = vld [vmem:[%s1863_s6 + $0x30] sm:$0xff]  ;;  %v1195_v34 = vld [vmem:[%s1863_s6 + $0x38] sm:$0xff]  ;;  %v1199_v36 = vld [vmem:[%s1863_s6 + $0x40] sm:$0xff]  ;;  %s1954_s5 = scalar_lea.vmem [#allocation8], %s1186_s8  ;;  %vm843_vm4 = vcmask 785920  }
  0x81   : > { %1314 = vmatprep.subr.bf16.mxu0 %v1633_v0  ;;  %v285_v17 = vld [vmem:[%s1894_s9] sm:$0xff]  ;;  %v1321_v35 = vpack.c.bf16 %v1195_v34, %v1194_v33  ;;  %v1200_v37 = vld [vmem:[%s1863_s6 + $0x48] sm:$0xff]  ;;  %v1201_v40 = vld [vmem:[%s1863_s6 + $0x50] sm:$0xff]  ;;  %v1639_v33 = vmov 32   ;;  %s1214_s20 = sshll.u32 %s1618_s15, 7  ;;  %s1050_s19 = sshll.u32 %s1954_s5, 4  ;;  %s1978_s19 = int_to_ptr.vmem [resolvable:$true] %s1050_s19 }
  0x82   : > { %1259 = vmatpush3.msra.mxu1 %v285_v17  ;;  %v1324_v39 = vpack.c.bf16 %v1200_v37, %v1199_v36  ;;  %v1202_v41 = vld [vmem:[%s1863_s6 + $0x58] sm:$0xff]  ;;  %v1196_v62 = vld [vmem:[%s1894_s9 + $0x8] sm:$0xff]  ;;  %1417 = vset.pattern.permute.xlu0 %v1639_v33  ;;  %vm1033_vm5 = vcmask 1048320   ;;  %s1976_s7 = scalar_lea.hbm %s2029_s3, %s1214_s20  ;;  %s1036_s22 = scalar_lea.sflag [#allocation4], %s1851_s21 }
  0x83   : > { %1317 = vmatprep.subr.bf16.mxu1 %v1633_v0  ;;  %v1327_v42 = vpack.c.bf16 %v1202_v41, %v1201_v40  ;;  %1416 = vset.pattern.permute.xlu1 %v1639_v33  ;;  %s1540_s8 = scalar_lea.vmem %s1978_s19, 128  ;;  %p2055_p5 = scmp.ne.s32.totalorder %s2042_s25, 0 }
  0x84   : > { %1316 = vmatpush3.bf16.msra.mxu0 %v1315_v7  ;;  %662 = vrot.lane.b32.xlu1 %v1880_v8, %s1637_s24  ;;  %p1541_p13 = scmp.ne.s32.totalorder %s1978_s19, %s1540_s8  ;;  %s1640_s15 = smov [#allocation8]  }
  0x85   : > { %1274 = vmatprep.subr.mxu0 %v1635_v1  ;;  %s1544_s1 = sshll.u32 %s1640_s15, 4  ;;  %s1545_s1 = int_to_ptr.vmem [resolvable:$false] %s1544_s1 }
  0x86   : > { %p1542_p6 = pnand %p1541_p13, %p2055_p5  ;;  %s1546_s4 = scalar_lea.vmem %s1545_s1, 256 }
  0x87   : > { %1256 = vmatmul.mubr.msk.f32.vlgmr.msra.gmra.mrb[0].mxu0 %vm286_vm1, %v1880_v8  ;;  %p1547_p9 = scmp.lt.s32.totalorder %s1978_s19, %s1545_s1  ;;  %p1548_p12 = scmp.lt.s32.totalorder %s1546_s4, %s1540_s8 }
  0x88   : > { %1276 = vmatprep.mubr.msk.f32.mxu0 %vm1634_vm0, %v1635_v1  ;;  %1275 = vmatpush3.msra.mxu0 %v1196_v62  ;;  %p1543_p8 = pneg %p1542_p6 }
  0x89   : > { %1290 = vmatprep.subr.mxu0 %v1635_v1  ;;  %p1549_p4 = por %p1548_p12, %p1547_p9 }
  0x8b   : > { %p1550_p10 = pnand %p1549_p4, %p1543_p8 }
  0xf2   : > { %v473_v38 = vpop.permute.xlu1 %472 }
  0xf6   : > { %v663_v43 = vpop.permute.xlu1 %662 }
 0x15a   : > { %v356_v9 = vpop.f32.mrb[0].mxu0 }
 0x15b   : > { %v1257_v10 = vpop.f32.mrb[1].mxu0  ;;  %v361_v11 = vsel %vm360_vm2, %v356_v9, -inf }
 0x15c   : > { %362 = vmax.xlane.f32.xlu0 %v361_v11 }
 0x1e9   : > { %v363_v12 = vpop.xlane.xlu0 %362 }
 0x1ea   : > { %v364_v13 = vsub.f32 %v356_v9, %v363_v12 }
 0x1ec   : > { %v365_v14 = vmul.f32 1.442695, %v364_v13  ;;  %v376_v19 = vmul.f32 5.0, %v364_v13 }
 0x1ee   : > { %1418 = vpow2.f32 %v365_v14  ;;  %v377_v20 = vmul.f32 1.442695, %v376_v19 }
 0x1f8   : > { %v1419_v15 = vpop.eup %1418 }
 0x1f9   : > { %v367_v16 = vsel %vm360_vm2, %v1419_v15, 0.0 }
 0x1fa   : > { %368 = vadd.xlane.f32.xlu0 %v367_v16 }
 0x287   : > { %v369_v18 = vpop.xlane.xlu0 %368 }
 0x288   : > { %1420 = vrcp.f32 %v369_v18 }
 0x289   : > { %1422 = vpow2.f32 %v377_v20  ;;  %v1203_v20 = vld [vmem:[%s1894_s9 + $0x10] sm:$0xff] }
 0x292   : > { %v1421_v21 = vpop.eup %1420 }
 0x293   : > { %v371_v22 = vmul.f32 %v1421_v21, %v369_v18  ;;  %v1423_v29 = vpop.eup %1422 }
 0x295   : > { %v372_v23 = vsub.f32 2.0, %v371_v22 }
 0x297   : > { %v373_v24 = vmul.f32 %v1421_v21, %v372_v23  ;;  %v1206_v23 = vld [vmem:[%s1863_s6 + $0x60] sm:$0xff] }
 0x299   : > { %v374_v25 = vmul.f32 %v373_v24, %v373_v24  ;;  %v1207_v24 = vld [vmem:[%s1863_s6 + $0x68] sm:$0xff] }
 0x29a   : > { %v1330_v27 = vpack.c.bf16 %v1207_v24, %v1206_v23 }
 0x29b   : > { %v375_v26 = vmul.f32 %v374_v25, %v374_v25 }
 0x29d   : > { %v379_v30 = vmul.f32 %v1423_v29, %v375_v26  ;;  %v1208_v29 = vld [vmem:[%s1863_s6 + $0x70] sm:$0xff] }
 0x29f   : > { %v380_v32 = vadd.f32 %v1419_v15, %v379_v30  ;;  %v1209_v30 = vld [vmem:[%s1863_s6 + $0x78] sm:$0xff] }
 0x2a1   : > { %1261 = vmatmul.mubr.msk.f32.vlgmr.msra.gmra.mrb[0].mxu1 %vm360_vm2, %v380_v32 }
 0x2a2   : > { %1319 = vmatpush3.bf16.msra.mxu1 %v1318_v31  ;;  %1271 = vmatprep.mubr.msk.f32.mxu1 %vm1634_vm0, %v1635_v1  ;;  %v1333_v31 = vpack.c.bf16 %v1209_v30, %v1208_v29 }
 0x2a3   : > { %1320 = vmatprep.subr.bf16.mxu1 %v1633_v0 }
 0x2a6   : > { %1322 = vmatpush3.bf16.msra.mxu1 %v1321_v35 }
 0x2a7   : > { %1323 = vmatprep.subr.bf16.mxu1 %v1633_v0 }
 0x2a9   : > { %1272 = vmatmul.mubr.msk.f32.vlgmr.msra.gmra.mrb[2].mxu1 %vm286_vm1, %v473_v38 }
 0x2aa   : > { %1325 = vmatpush3.bf16.msra.mxu1 %v1324_v39  ;;  %1287 = vmatprep.mubr.msk.f32.mxu1 %vm1634_vm0, %v1635_v1 }
 0x2ab   : > { %1326 = vmatprep.subr.bf16.mxu1 %v1633_v0 }
 0x2ae   : > { %1328 = vmatpush3.bf16.msra.mxu1 %v1327_v42 }
 0x2af   : > { %1306 = vmatprep.subr.mxu1 %v1635_v1 }
 0x2b1   : > { %1288 = vmatmul.mubr.msk.f32.vlgmr.msra.gmra.mrb[4].mxu1 %vm286_vm1, %v663_v43 }
 0x2b2   : > { %1308 = vmatprep.mubr.msk.f32.mxu1 %vm1634_vm0, %v1635_v1 }
 0x374   : > { %v1919_v44 = vpop.f32.mrb[0].mxu1 }
 0x375   : > { %v1262_v45 = vpop.f32.mrb[1].mxu1 }
 0x37c   : > { %v542_v46 = vpop.f32.mrb[2].mxu1 }
 0x37d   : > { %v1273_v47 = vpop.f32.mrb[3].mxu1  ;;  %v546_v48 = vsel %vm360_vm2, %v542_v46, -inf }
 0x37e   : > { %547 = vmax.xlane.f32.xlu0 %v546_v48 }
 0x384   : > { %v732_v49 = vpop.f32.mrb[4].mxu1 }
 0x385   : > { %v1289_v50 = vpop.f32.mrb[5].mxu1  ;;  %v736_v51 = vsel %vm360_vm2, %v732_v49, -inf }
 0x386   : > { %737 = vmax.xlane.f32.xlu1 %v736_v51 }
 0x40b   : > { %v548_v52 = vpop.xlane.xlu0 %547 }
 0x40c   : > { %v549_v53 = vsub.f32 %v542_v46, %v548_v52 }
 0x40e   : > { %v550_v54 = vmul.f32 1.442695, %v549_v53  ;;  %v561_v2 = vmul.f32 5.0, %v549_v53 }
 0x410   : > { %1424 = vpow2.f32 %v550_v54  ;;  %v562_v3 = vmul.f32 1.442695, %v561_v2 }
 0x413   : > { %v738_v55 = vpop.xlane.xlu1 %737 }
 0x414   : > { %v739_v56 = vsub.f32 %v732_v49, %v738_v55 }
 0x416   : > { %v740_v57 = vmul.f32 1.442695, %v739_v56  ;;  %v751_v6 = vmul.f32 5.0, %v739_v56 }
 0x418   : > { %1426 = vpow2.f32 %v740_v57  ;;  %v752_v10 = vmul.f32 1.442695, %v751_v6 }
 0x41a   : > { %v1425_v58 = vpop.eup %1424 }
 0x41b   : > { %v552_v59 = vsel %vm360_vm2, %v1425_v58, 0.0 }
 0x41c   : > { %553 = vadd.xlane.f32.xlu0 %v552_v59 }
 0x422   : > { %v1427_v60 = vpop.eup %1426 }
 0x423   : > { %v742_v61 = vsel %vm360_vm2, %v1427_v60, 0.0 }
 0x424   : > { %743 = vadd.xlane.f32.xlu0 %v742_v61 }
 0x43a   : > { %852 = vrot.lane.b32.xlu0 %v1880_v8, %s1638_s10 }
 0x4a9   : > { %v554_v63 = vpop.xlane.xlu0 %553 }
 0x4aa   : > { %1428 = vrcp.f32 %v554_v63 }
 0x4b1   : > { %v744_v4 = vpop.xlane.xlu0 %743 }
 0x4b2   : > { %1430 = vrcp.f32 %v744_v4 }
 0x4b3   : > { %1432 = vpow2.f32 %v562_v3 }
 0x4b4   : > { %v1429_v5 = vpop.eup %1428  ;;  %1434 = vpow2.f32 %v752_v10 }
 0x4b5   : > { %v556_v7 = vmul.f32 %v1429_v5, %v554_v63  ;;  %v853_v32 = vpop.permute.xlu0 %852  ;;  %1436 = vrcp.f32 %v1919_v44 }
 0x4b7   : > { %v557_v9 = vsub.f32 2.0, %v556_v7 }
 0x4b9   : > { %v558_v11 = vmul.f32 %v1429_v5, %v557_v9 }
 0x4bb   : > { %v559_v12 = vmul.f32 %v558_v11, %v558_v11 }
 0x4bc   : > { %v1431_v8 = vpop.eup %1430 }
 0x4bd   : > { %v560_v13 = vmul.f32 %v559_v12, %v559_v12  ;;  %v746_v14 = vmul.f32 %v1431_v8, %v744_v4  ;;  %v1433_v15 = vpop.eup %1432 }
 0x4be   : > { %v1435_v25 = vpop.eup %1434 }
 0x4bf   : > { %v564_v16 = vmul.f32 %v1433_v15, %v560_v13  ;;  %v747_v17 = vsub.f32 2.0, %v746_v14  ;;  %v1437_v39 = vpop.eup %1436 }
 0x4c0   : > { %v455_v40 = vmul.f32 %v1437_v39, %v1919_v44 }
 0x4c1   : > { %v565_v18 = vadd.f32 %v1425_v58, %v564_v16  ;;  %v748_v19 = vmul.f32 %v1431_v8, %v747_v17  ;;  %v1210_v58 = vld [vmem:[%s1894_s9 + $0x18] sm:$0xff] }
 0x4c2   : > { %v456_v41 = vsub.f32 2.0, %v455_v40  ;;  %1307 = vmatpush3.msra.mxu1 %v1210_v58 }
 0x4c3   : > { %v749_v21 = vmul.f32 %v748_v19, %v748_v19  ;;  %1277 = vmatmul.mubr.msk.f32.vlgmr.msra.gmra.mrb[2].mxu0 %vm360_vm2, %v565_v18 }
 0x4c4   : > { %1291 = vmatpush3.msra.mxu0 %v1203_v20  ;;  %1292 = vmatprep.mubr.msk.f32.mxu0 %vm1634_vm0, %v1635_v1  ;;  %v457_v42 = vmul.f32 %v1437_v39, %v456_v41 }
 0x4c5   : > { %v750_v22 = vmul.f32 %v749_v21, %v749_v21  ;;  %1329 = vmatprep.subr.bf16.mxu0 %v1633_v0 }
 0x4c7   : > { %v754_v26 = vmul.f32 %v1435_v25, %v750_v22 }
 0x4c9   : > { %v755_v28 = vadd.f32 %v1427_v60, %v754_v26 }
 0x4cb   : > { %1293 = vmatmul.mubr.msk.f32.vlgmr.msra.gmra.mrb[4].mxu0 %vm360_vm2, %v755_v28 }
 0x4cc   : > { %1331 = vmatpush3.bf16.msra.mxu0 %v1330_v27  ;;  %1303 = vmatprep.mubr.msk.f32.mxu0 %vm1634_vm0, %v1635_v1 }
 0x4cd   : > { %1332 = vmatprep.subr.bf16.mxu0 %v1633_v0 }
 0x4d0   : > { %1334 = vmatpush3.bf16.msra.mxu0 %v1333_v31 }
 0x4d3   : > { %1304 = vmatmul.mubr.msk.f32.vlgmr.msra.gmra.mrb[6].mxu0 %vm286_vm1, %v853_v32 }
 0x596   : > { %v1943_v34 = vpop.f32.mrb[2].mxu0 }
 0x597   : > { %v1278_v35 = vpop.f32.mrb[3].mxu0 }
 0x59e   : > { %v1945_v36 = vpop.f32.mrb[4].mxu0 }
 0x59f   : > { %v1294_v37 = vpop.f32.mrb[5].mxu0 }
 0x5a6   : > { %v922_v38 = vpop.f32.mrb[6].mxu0 }
 0x5a7   : > { %v1305_v1 = vpop.f32.mrb[7].mxu0  ;;  %v926_v0 = vsel %vm360_vm2, %v922_v38, -inf }
 0x5a8   : > { %927 = vmax.xlane.f32.xlu0 %v926_v0 }
 0x5be   : > { %460 = vperm.xlu0 %1417, %v457_v42  }
 0x635   : > { %v928_v43 = vpop.xlane.xlu0 %927 }
 0x636   : > { %v929_v45 = vsub.f32 %v922_v38, %v928_v43 }
 0x638   : > { %v930_v46 = vmul.f32 1.442695, %v929_v45  ;;  %v941_v60 = vmul.f32 5.0, %v929_v45 }
 0x63a   : > { %1438 = vpow2.f32 %v930_v46  ;;  %v942_v61 = vmul.f32 1.442695, %v941_v60 }
 0x63b   : > { %1440 = vrcp.f32 %v1943_v34 }
 0x63c   : > { %1442 = vrcp.f32 %v1945_v36 }
 0x63d   : > { %v461_v47 = vpop.permute.xlu0 %460 }
 0x63e   : > { %v463_v48 = vmul.f32 %v461_v47, %v1919_v44 }
 0x640   : > { %464 = vst.msk [vmem:[%s1954_s5] sm:$0xff] %vm286_vm1, %v463_v48 }
 0x644   : > { %v1439_v49 = vpop.eup %1438 }
 0x645   : > { %v932_v50 = vsel %vm360_vm2, %v1439_v49, 0.0  ;;  %v1441_v51 = vpop.eup %1440 }
 0x646   : > { %933 = vadd.xlane.f32.xlu1 %v932_v50  ;;  %v640_v52 = vmul.f32 %v1441_v51, %v1943_v34  ;;  %v1443_v53 = vpop.eup %1442 }
 0x647   : > { %v830_v54 = vmul.f32 %v1443_v53, %v1945_v36 }
 0x648   : > { %v641_v44 = vsub.f32 2.0, %v640_v52 }
 0x649   : > { %v831_v55 = vsub.f32 2.0, %v830_v54 }
 0x64a   : > { %v642_v56 = vmul.f32 %v1441_v51, %v641_v44 }
 0x64b   : > { %v832_v57 = vmul.f32 %v1443_v53, %v831_v55 }
 0x657   : > { %645 = vperm.xlu1 %1416, %v642_v56  }
 0x65b   : > { %835 = vperm.xlu1 %1416, %v832_v57  }
 0x6d3   : > { %v934_v59 = vpop.xlane.xlu1 %933 }
 0x6d4   : > { %1444 = vrcp.f32 %v934_v59 }
 0x6d5   : > { %1446 = vpow2.f32 %v942_v61 }
 0x6d7   : > { %v646_v14 = vpop.permute.xlu1 %645 }
 0x6d8   : > { %v648_v16 = vmul.f32 %v646_v14, %v1943_v34 }
 0x6db   : > { %v836_v17 = vpop.permute.xlu1 %835 }
 0x6dc   : > { %v838_v18 = vmul.f32 %v836_v17, %v1945_v36 }
 0x6de   : > { %v1445_v62 = vpop.eup %1444 }
 0x6df   : > { %v936_v63 = vmul.f32 %v1445_v62, %v934_v59  ;;  %v1447_v6 = vpop.eup %1446 }
 0x6e1   : > { %v937_v2 = vsub.f32 2.0, %v936_v63 }
 0x6e3   : > { %v938_v3 = vmul.f32 %v1445_v62, %v937_v2 }
 0x6e5   : > { %v939_v4 = vmul.f32 %v938_v3, %v938_v3 }
 0x6e7   : > { %v940_v5 = vmul.f32 %v939_v4, %v939_v4 }
 0x6e9   : > { %v944_v7 = vmul.f32 %v1447_v6, %v940_v5 }
 0x6eb   : > { %v945_v9 = vadd.f32 %v1439_v49, %v944_v7 }
 0x6ed   : > { %1309 = vmatmul.mubr.msk.f32.vlgmr.msra.gmra.mrb[6].mxu1 %vm360_vm2, %v945_v9 }
 0x7c0   : > { %v1015_v10 = vpop.f32.mrb[6].mxu1 }
 0x7c1   : > { %1448 = vrcp.f32 %v1015_v10  ;;  %v1310_v11 = vpop.f32.mrb[7].mxu1 }
 0x7cb   : > { %v1449_v12 = vpop.eup %1448 }
 0x7cc   : > { %v1020_v8 = vmul.f32 %v1449_v12, %v1015_v10 }
 0x7ce   : > { %v1021_v13 = vsub.f32 2.0, %v1020_v8 }
 0x7d0   : > { %v1022_v15 = vmul.f32 %v1449_v12, %v1021_v13 }
 0x7d2   : > { %1025 = vperm.xlu1 %1416, %v1022_v15  }
 0x7d6   : > { %650 = vrot.lane.b32.xlu1 %v648_v16, %s1638_s10 }
 0x7da   : > { %840 = vrot.lane.b32.xlu1 %v838_v18, %s1637_s24 }
 0x851   : > { %v1026_v19 = vpop.permute.xlu1 %1025 }
 0x852   : > { %v1028_v20 = vmul.f32 %v1026_v19, %v1015_v10 }
 0x854   : > { %1030 = vrot.lane.b32.xlu1 %v1028_v20, %s1636_s18 }
 0x855   : > { %v651_v21 = vpop.permute.xlu1 %650 }
 0x856   : > { %654 = vst.msk [vmem:[%s1954_s5] sm:$0xff] %vm653_vm3, %v651_v21 }
 0x859   : > { %v841_v22 = vpop.permute.xlu1 %840 }
 0x85a   : > { %844 = vst.msk [vmem:[%s1954_s5] sm:$0xff] %vm843_vm4, %v841_v22 }
 0x8c6   : > { %v1031_v23 = vpop.permute.xlu1 %1030 }
 0x8c7   : > { %1034 = vst.msk [vmem:[%s1954_s5] sm:$0xff] %vm1033_vm5, %v1031_v23 }
 0x8c8   : > { %1553 = shalt.err (!%p1550_p10)
}
 0x8c9   : > { %s1554_s21 = scalar_lea.hbm %s1976_s7, 128  ;;  %s1558_s30 = scalar_lea.hbm %s2029_s3, 256 }
 0x8ca   : > { %p1555_p0 = scmp.ne.s32.totalorder %s1976_s7, %s1554_s21  ;;  %p1559_p3 = scmp.lt.u32.totalorder %s1976_s7, %s2029_s3 }
 0x8cb   : > { %p1560_p2 = scmp.lt.u32.totalorder %s1558_s30, %s1554_s21  ;;  %p1562_p13 = scmp.lt.u32.totalorder %s1554_s21, %s1976_s7 }
 0x8cc   : > { %p1556_p11 = pnand %p1555_p0, %p2055_p5 }
 0x8cd   : > { %p1561_p7 = por %p1560_p2, %p1559_p3 }
 0x8ce   : > { %p1557_p1 = pneg %p1556_p11 }
 0x8cf   : > { %p1563_p6 = por %p1562_p13, %p1561_p7 }
 0x8d1   : > { %p1564_p8 = pnand %p1563_p6, %p1557_p1 }
 0x8d3   : > { %1567 = shalt.err (!%p1564_p8)
}
 0x8d4   : > { %1341 = dma.vmem_to_hbm [thread:$0]  (%p2055_p5), %s1978_s19, 128, %s1976_s7, %s1036_s22  }
 0x8d5 PF: > { %s1062_s24 = sand.u32 1, %s1606_s12   ;;  %p2056_p9 = scmp.ne.s32.totalorder %s2043_s27, 0 }
 0x8d6   : > { %p2057_p12 = scmp.ge.s32.totalorder %s1626_s17, 2  ;;  %s1063_s28 = scalar_lea.sflag [#allocation4], %s1062_s24 }
 0x8d8   : > { %p1354_p4 = pnand %p2057_p12, %p2056_p9 }
 0x8da   : > { %1601 = dma.done.wait (!%p1354_p4), %s1063_s28, 128  }
 0x8db   : > { %1603 = vsyncadd (!%p1354_p4), %s1063_s28, 4294967168  ;;  %s22_s17 = sadd.s32 1, %s1626_s17   ;;  %s2058_s25 = sld [smem:[#allocation12_spill]] }
 0x8dc   : > { %p19_p10 = scmp.ge.s32.totalorder %s22_s17, 4   ;;  %s2059_s12 = smov %s1610_s13 }
 0x8dd   : > { %s2060_s13 = smov %s1614_s14  ;;  %s2061_s14 = smov %s1721_s26 }
 0x8de   : > { %s2062_s15 = smov %s1622_s16  ;;  %21 = sbr.rel (!%p19_p10) target bundleno = 11 (0xb), region = 107 }
 0x8e1   : > { %s2063_s16 = smov %s2058_s25 }
 0x8e5   :  { %1068 = vsyncpa [#allocation3], 1 }
 0x8e6   :  { %1070 = vsyncpa [#allocation3 + $0x1], 1 }
 0x8e7   :  { %1071 = vsyncpa [#allocation6], 1 }
 0x8e8   :  { %1073 = vsyncpa [#allocation6 + $0x1], 1 }
 0x8e9   :  { %1074 = vsyncpa [#allocation4], 1 }
 0x8ea   :  { %1076 = vsyncpa [#allocation4 + $0x1], 1 }

</bundles_post_ra>
